<compile_context>
chip_gen: v5e
topology: v5e:2x2
jax: 0.10.0
libtpu: 0.0.40
codegen_flags: <defaults>
</compile_context>

<pallas_src>
import math

import jax
import jax.numpy as jnp
import numpy as np
from jax import lax
from jax.experimental import pallas as pl
from jax.experimental.pallas import tpu as pltpu


def _vmem():
    # whole-array block resident in VMEM (everything here is tiny)
    return pl.BlockSpec(memory_space=pltpu.MemorySpace.VMEM)


# ------------------------- fused forward kernel -----------------------------
def _make_fused_kernel(n_layers, d_real, head_dim):
    inv_sqrt_d = 1.0 / math.sqrt(head_dim)
    inv_d = 1.0 / float(d_real)

    def kernel(atom_ref, lap_ref, bond_ref,
               src_oh_ref, dst_oh_ref, dst_oh_t_ref, blk_ref, mask_ref,
               wh_ref, bh_ref, wl_ref, bl_ref, we_ref, be_ref,
               w_qkvpe_ref, w_o_ref, b_o_ref, ln1_ref,
               ffn1_w_ref, ffn1_b_ref, ffn2_w_ref, ffn2_b_ref, ln2_ref, bn_ref,
               h_out_ref):
        f32 = jnp.float32
        mask = mask_ref[...]               # [1, Dp]; 1.0 on real feature lanes

        def layernorm(x, g, b, eps=1e-5):
            # padded lanes of x are exactly zero, so full-width sums equal
            # real-width sums; divide by the real hidden width d_real.
            mu = jnp.sum(x, axis=-1, keepdims=True) * inv_d
            xc = (x - mu) * mask
            var = jnp.sum(xc * xc, axis=-1, keepdims=True) * inv_d
            return xc * lax.rsqrt(var + eps) * g + b

        S = src_oh_ref[...]                # [E, N] one-hot of edge source
        Dm = dst_oh_ref[...]               # [E, N] one-hot of edge destination
        DmT = dst_oh_t_ref[...]            # [N, E]
        B = blk_ref[...]                   # [Dp, Dp] same-head indicator (block diag)

        # ---- input embeddings (in_feat_dropout is identity in eval mode) ----
        h = (jnp.dot(atom_ref[...], wh_ref[...], preferred_element_type=f32) + bh_ref[...]
             + jnp.dot(lap_ref[...], wl_ref[...], preferred_element_type=f32) + bl_ref[...])
        e = jnp.dot(bond_ref[...], we_ref[...], preferred_element_type=f32) + be_ref[...]

        for l in range(n_layers):          # statically unrolled; h/e stay on-chip
            # --- MultiHeadAttentionLayer (Q/K/V/proj_e: no bias) ---
            Qh = jnp.dot(h, w_qkvpe_ref[l, 0], preferred_element_type=f32)
            Kh = jnp.dot(h, w_qkvpe_ref[l, 1], preferred_element_type=f32)
            Vh = jnp.dot(h, w_qkvpe_ref[l, 2], preferred_element_type=f32)
            Pe = jnp.dot(e, w_qkvpe_ref[l, 3], preferred_element_type=f32)

            K_src = jnp.dot(S, Kh, preferred_element_type=f32)    # [E, Dp] gather
            Q_dst = jnp.dot(Dm, Qh, preferred_element_type=f32)   # [E, Dp] gather
            V_src = jnp.dot(S, Vh, preferred_element_type=f32)    # [E, Dp] gather

            # per-edge per-head score, broadcast within each head by the
            # block-diagonal matmul (single lane-dense MXU op)
            score_full = jnp.dot(K_src * Q_dst, B,
                                 preferred_element_type=f32) * inv_sqrt_d
            e_attn = score_full * Pe                               # [E, Dp]
            att_full = jnp.exp(jnp.clip(
                jnp.dot(e_attn, B, preferred_element_type=f32), -5.0, 5.0))

            wV = jnp.dot(DmT, att_full * V_src, preferred_element_type=f32)  # scatter-add
            z = jnp.dot(DmT, att_full, preferred_element_type=f32)           # scatter-add
            h_attn = wV * pl.reciprocal(z + 1e-6, approx=True)

            # --- O projections (+ residual + LayerNorm); attn dropout = id ---
            bo = b_o_ref[l]                                        # [2, Dp]
            h1 = jnp.dot(h_attn, w_o_ref[l, 0], preferred_element_type=f32) + bo[0:1, :]
            e1 = jnp.dot(e_attn, w_o_ref[l, 1], preferred_element_type=f32) + bo[1:2, :]
            ln1 = ln1_ref[l]                                       # [4, Dp]
            h1 = layernorm(h + h1, ln1[0:1, :], ln1[1:2, :])
            e1 = layernorm(e + e1, ln1[2:3, :], ln1[3:4, :])

            # --- FFNs (+ residual + LayerNorm) ---
            f1b = ffn1_b_ref[l]
            f2b = ffn2_b_ref[l]
            ln2 = ln2_ref[l]
            h2 = jnp.maximum(jnp.dot(h1, ffn1_w_ref[l, 0],
                                     preferred_element_type=f32) + f1b[0:1, :], 0.0)
            h2 = jnp.dot(h2, ffn2_w_ref[l, 0], preferred_element_type=f32) + f2b[0:1, :]
            h2 = layernorm(h1 + h2, ln2[0:1, :], ln2[1:2, :])

            e2 = jnp.maximum(jnp.dot(e1, ffn1_w_ref[l, 1],
                                     preferred_element_type=f32) + f1b[1:2, :], 0.0)
            e2 = jnp.dot(e2, ffn2_w_ref[l, 1], preferred_element_type=f32) + f2b[1:2, :]
            e2 = layernorm(e1 + e2, ln2[2:3, :], ln2[3:4, :])

            # --- outer nn.BatchNorm1d(hidden_dim) on h (eval: running stats) ---
            bn = bn_ref[l]                                         # [4, Dp]
            h = (h2 - bn[2:3, :]) * lax.rsqrt(bn[3:4, :] + 1e-5) * bn[0:1, :] + bn[1:2, :]
            e = e2

        h_out_ref[...] = h

    return kernel


def graph_transformer_forward(atom, lap, bond, graph, emb_p, stk, *, d_real, head_dim):
    N = atom.shape[0]
    DP = emb_p["wh"].shape[1]
    L = stk["w_qkvpe"].shape[0]
    kernel = _make_fused_kernel(L, d_real, head_dim)
    return pl.pallas_call(
        kernel,
        out_shape=jax.ShapeDtypeStruct((N, DP), jnp.float32),
        in_specs=[_vmem()] * 24,
        out_specs=_vmem(),
    )(atom, lap, bond,
      graph["src_oh"], graph["dst_oh"], graph["dst_oh_t"],
      graph["head_blk"], graph["mask"],
      emb_p["wh"], emb_p["bh"], emb_p["wl"], emb_p["bl"], emb_p["we"], emb_p["be"],
      stk["w_qkvpe"], stk["w_o"], stk["b_o"], stk["ln1"],
      stk["ffn1_w"], stk["ffn1_b"], stk["ffn2_w"], stk["ffn2_b"],
      stk["ln2"], stk["bn"])


# ------------------------ packing / padding helpers --------------------------
def _pad_cols(x, w):
    return jnp.pad(x, ((0, 0),) * (x.ndim - 1) + ((0, w - x.shape[-1]),))


def pack_graph(src, dst, N, D, dh, DP):
    f32 = jnp.float32
    src_oh = jax.nn.one_hot(src, N, dtype=f32)                       # [E, N]
    dst_oh = jax.nn.one_hot(dst, N, dtype=f32)                       # [E, N]
    head_id = jnp.arange(D) // dh
    blk = (head_id[:, None] == head_id[None, :]).astype(f32)         # [D, D]
    blk = jnp.pad(blk, ((0, DP - D), (0, DP - D)))
    mask = jnp.pad(jnp.ones((1, D), f32), ((0, 0), (0, DP - D)))
    return {"src_oh": src_oh, "dst_oh": dst_oh, "dst_oh_t": dst_oh.T,
            "head_blk": blk, "mask": mask}


def pack_params(emb, layers, D, DP, FP):
    emb_p = {"wh": _pad_cols(emb["wh"], DP), "bh": _pad_cols(emb["bh"], DP),
             "wl": _pad_cols(emb["wl"], DP), "bl": _pad_cols(emb["bl"], DP),
             "we": _pad_cols(emb["we"], DP), "be": _pad_cols(emb["be"], DP)}
    w_qkvpe, w_o, b_o, ln1, f1w, f1b, f2w, f2b, ln2, bn = ([] for _ in range(10))
    for lp in layers:
        w_qkvpe.append(jnp.pad(lp["w_qkvpe"], ((0, 0), (0, DP - D), (0, DP - D))))
        w_o.append(jnp.pad(lp["w_o"], ((0, 0), (0, DP - D), (0, DP - D))))
        b_o.append(_pad_cols(lp["b_o"], DP))
        ln1.append(_pad_cols(lp["ln1"], DP))
        f1w.append(jnp.pad(lp["ffn1_w"], ((0, 0), (0, DP - D), (0, FP - 2 * D))))
        f1b.append(_pad_cols(lp["ffn1_b"], FP))
        f2w.append(jnp.pad(lp["ffn2_w"], ((0, 0), (0, FP - 2 * D), (0, DP - D))))
        f2b.append(_pad_cols(lp["ffn2_b"], DP))
        ln2.append(_pad_cols(lp["ln2"], DP))
        bn_p = _pad_cols(lp["bn"], DP)
        bn_p = bn_p.at[3, D:].set(1.0)     # padded running_var = 1 (keeps rsqrt tame)
        bn.append(bn_p)
    stk = {"w_qkvpe": jnp.stack(w_qkvpe), "w_o": jnp.stack(w_o),
           "b_o": jnp.stack(b_o), "ln1": jnp.stack(ln1),
           "ffn1_w": jnp.stack(f1w), "ffn1_b": jnp.stack(f1b),
           "ffn2_w": jnp.stack(f2w), "ffn2_b": jnp.stack(f2b),
           "ln2": jnp.stack(ln2), "bn": jnp.stack(bn)}
    return emb_p, stk


# --------------------------- pure-JAX reference -----------------------------
def _ref_ln(x, g, b, eps=1e-5):
    mu = x.mean(-1, keepdims=True)
    var = ((x - mu) ** 2).mean(-1, keepdims=True)
    return (x - mu) / jnp.sqrt(var + eps) * g + b


def reference_forward(atom, lap, bond, src, dst, emb, layers, N, H):
    h = atom @ emb["wh"] + emb["bh"][0] + lap @ emb["wl"] + emb["bl"][0]
    e = bond @ emb["we"] + emb["be"][0]
    for lp in layers:
        D = h.shape[1]
        dh = D // H
        Qh = (h @ lp["w_qkvpe"][0]).reshape(-1, H, dh)
        Kh = (h @ lp["w_qkvpe"][1]).reshape(-1, H, dh)
        Vh = (h @ lp["w_qkvpe"][2]).reshape(-1, H, dh)
        Pe = (e @ lp["w_qkvpe"][3]).reshape(-1, H, dh)
        score = (Kh[src] * Qh[dst]).sum(-1, keepdims=True) / math.sqrt(dh)
        e_att = score * Pe
        att = jnp.exp(jnp.clip(e_att.sum(-1, keepdims=True), -5.0, 5.0))
        wV = jax.ops.segment_sum(att * Vh[src], dst, num_segments=N)
        z = jax.ops.segment_sum(att, dst, num_segments=N)
        h_att = (wV / (z + 1e-6)).reshape(N, D)
        e_att = e_att.reshape(-1, D)
        h1 = _ref_ln(h + h_att @ lp["w_o"][0] + lp["b_o"][0], lp["ln1"][0], lp["ln1"][1])
        e1 = _ref_ln(e + e_att @ lp["w_o"][1] + lp["b_o"][1], lp["ln1"][2], lp["ln1"][3])
        h2 = jnp.maximum(h1 @ lp["ffn1_w"][0] + lp["ffn1_b"][0], 0.0) @ lp["ffn2_w"][0] + lp["ffn2_b"][0]
        h2 = _ref_ln(h1 + h2, lp["ln2"][0], lp["ln2"][1])
        e2 = jnp.maximum(e1 @ lp["ffn1_w"][1] + lp["ffn1_b"][1], 0.0) @ lp["ffn2_w"][1] + lp["ffn2_b"][1]
        e2 = _ref_ln(e1 + e2, lp["ln2"][2], lp["ln2"][3])
        h = (h2 - lp["bn"][2]) * lax.rsqrt(lp["bn"][3] + 1e-5) * lp["bn"][0] + lp["bn"][1]
        e = e2
    return h


# ------------------------------- driver --------------------------------------
if __name__ == "__main__":
    key = jax.random.PRNGKey(0)
    N, E = 8, 16                       # nodes, edges
    node_dim, edge_dim, pos_enc_dim = 16, 8, 8
    hidden_dim = 32
    n_heads = 4
    n_layers = 2
    D, dh = hidden_dim, hidden_dim // n_heads
    DP = 128                           # padded (lane-dense) hidden width
    FP = 128                           # padded FFN hidden width (2*D -> 128)
    f32 = jnp.float32

    ks = jax.random.split(key, 8)
    atom = jax.random.normal(ks[0], (N, node_dim), f32)
    lap = jax.random.normal(ks[1], (N, pos_enc_dim), f32)
    bond = jax.random.normal(ks[2], (E, edge_dim), f32)
    src = jax.random.randint(ks[3], (E,), 0, N)
    dst = jax.random.randint(ks[4], (E,), 0, N)

    # deterministic synthetic parameters (weights stored as [in, out])
    kw = jax.random.split(ks[5], 6)
    emb = {"wh": 0.1 * jax.random.normal(kw[0], (node_dim, D), f32),
           "bh": 0.1 * jax.random.normal(kw[1], (1, D), f32),
           "wl": 0.1 * jax.random.normal(kw[2], (pos_enc_dim, D), f32),
           "bl": 0.1 * jax.random.normal(kw[3], (1, D), f32),
           "we": 0.1 * jax.random.normal(kw[4], (edge_dim, D), f32),
           "be": 0.1 * jax.random.normal(kw[5], (1, D), f32)}

    ln_init = jnp.concatenate([jnp.ones((1, D), f32), jnp.zeros((1, D), f32),
                               jnp.ones((1, D), f32), jnp.zeros((1, D), f32)], 0)
    bn_init = jnp.concatenate([jnp.ones((1, D), f32), jnp.zeros((1, D), f32),
                               jnp.zeros((1, D), f32), jnp.ones((1, D), f32)], 0)

    layers = []
    lkeys = jax.random.split(ks[6], n_layers)
    for li in range(n_layers):
        k = jax.random.split(lkeys[li], 8)
        layers.append({
            "head_dim": dh,
            "w_qkvpe": 0.1 * jax.random.normal(k[0], (4, D, D), f32),
            "w_o": 0.1 * jax.random.normal(k[1], (2, D, D), f32),
            "b_o": 0.1 * jax.random.normal(k[2], (2, D), f32),
            "ln1": ln_init,
            "ffn1_w": 0.1 * jax.random.normal(k[3], (2, D, 2 * D), f32),
            "ffn1_b": 0.1 * jax.random.normal(k[4], (2, 2 * D), f32),
            "ffn2_w": 0.1 * jax.random.normal(k[5], (2, 2 * D, D), f32),
            "ffn2_b": 0.1 * jax.random.normal(k[6], (2, D), f32),
            "ln2": ln_init,
            "bn": bn_init,   # gamma, beta, running_mean, running_var (eval)
        })

    # densified graph structure + zero-padded / stacked parameters (glue, plain JAX)
    graph = pack_graph(src, dst, N, D, dh, DP)
    emb_p, stk = pack_params(emb, layers, D, DP, FP)

    # ---- fused Pallas forward (single pallas_call for embed + all layers) ----
    h_pad = graph_transformer_forward(atom, lap, bond, graph, emb_p, stk,
                                      d_real=D, head_dim=dh)
    h_pad = jax.block_until_ready(h_pad)
    h = h_pad[:, :D]

    # ---- verify against pure-JAX reference ----
    h_ref = reference_forward(atom, lap, bond, src, dst, emb, layers, N, n_heads)
    np.testing.assert_allclose(np.asarray(h), np.asarray(h_ref), rtol=5e-2, atol=5e-2)

    print("KERNEL_OK")
</pallas_src>

<mosaic_0001>
module attributes {stable_mosaic.version = 11 : i64} {
  func.func @kernel(%arg0: memref<8x16xf32, #tpu.memory_space<vmem>>, %arg1: memref<8x8xf32, #tpu.memory_space<vmem>>, %arg2: memref<16x8xf32, #tpu.memory_space<vmem>>, %arg3: memref<16x8xf32, #tpu.memory_space<vmem>>, %arg4: memref<16x8xf32, #tpu.memory_space<vmem>>, %arg5: memref<8x16xf32, #tpu.memory_space<vmem>>, %arg6: memref<128x128xf32, #tpu.memory_space<vmem>>, %arg7: memref<1x128xf32, #tpu.memory_space<vmem>>, %arg8: memref<16x128xf32, #tpu.memory_space<vmem>>, %arg9: memref<1x128xf32, #tpu.memory_space<vmem>>, %arg10: memref<8x128xf32, #tpu.memory_space<vmem>>, %arg11: memref<1x128xf32, #tpu.memory_space<vmem>>, %arg12: memref<8x128xf32, #tpu.memory_space<vmem>>, %arg13: memref<1x128xf32, #tpu.memory_space<vmem>>, %arg14: memref<2x4x128x128xf32, #tpu.memory_space<vmem>>, %arg15: memref<2x2x128x128xf32, #tpu.memory_space<vmem>>, %arg16: memref<2x2x128xf32, #tpu.memory_space<vmem>>, %arg17: memref<2x4x128xf32, #tpu.memory_space<vmem>>, %arg18: memref<2x2x128x128xf32, #tpu.memory_space<vmem>>, %arg19: memref<2x2x128xf32, #tpu.memory_space<vmem>>, %arg20: memref<2x2x128x128xf32, #tpu.memory_space<vmem>>, %arg21: memref<2x2x128xf32, #tpu.memory_space<vmem>>, %arg22: memref<2x4x128xf32, #tpu.memory_space<vmem>>, %arg23: memref<2x4x128xf32, #tpu.memory_space<vmem>>, %arg24: memref<8x128xf32, #tpu.memory_space<vmem>>) attributes {dimension_semantics = [], scalar_prefetch = 0 : i64, scratch_operands = 0 : i64, tpu.core_type = #tpu.core_type<tc>} {
    %c0 = arith.constant 0 : index
    %c0_0 = arith.constant 0 : index
    %0 = vector.load %arg7[%c0, %c0_0] : memref<1x128xf32, #tpu.memory_space<vmem>>, vector<1x128xf32>
    %c0_1 = arith.constant 0 : index
    %c0_2 = arith.constant 0 : index
    %1 = vector.load %arg3[%c0_1, %c0_2] : memref<16x8xf32, #tpu.memory_space<vmem>>, vector<16x8xf32>
    %c0_3 = arith.constant 0 : index
    %c0_4 = arith.constant 0 : index
    %2 = vector.load %arg4[%c0_3, %c0_4] : memref<16x8xf32, #tpu.memory_space<vmem>>, vector<16x8xf32>
    %c0_5 = arith.constant 0 : index
    %c0_6 = arith.constant 0 : index
    %3 = vector.load %arg5[%c0_5, %c0_6] : memref<8x16xf32, #tpu.memory_space<vmem>>, vector<8x16xf32>
    %c0_7 = arith.constant 0 : index
    %c0_8 = arith.constant 0 : index
    %4 = vector.load %arg6[%c0_7, %c0_8] : memref<128x128xf32, #tpu.memory_space<vmem>>, vector<128x128xf32>
    %c0_9 = arith.constant 0 : index
    %c0_10 = arith.constant 0 : index
    %5 = vector.load %arg0[%c0_9, %c0_10] : memref<8x16xf32, #tpu.memory_space<vmem>>, vector<8x16xf32>
    %c0_11 = arith.constant 0 : index
    %c0_12 = arith.constant 0 : index
    %6 = vector.load %arg8[%c0_11, %c0_12] : memref<16x128xf32, #tpu.memory_space<vmem>>, vector<16x128xf32>
    %cst = arith.constant dense<0.000000e+00> : vector<8x128xf32>
    %7 = tpu.matmul %5, %6, %cst {dimension_numbers = #tpu.dot_dimension_numbers<[1], [0], [0], [1], [0, 0, 1, 1], [], []>} : vector<8x16xf32>, vector<16x128xf32>, vector<8x128xf32> -> vector<8x128xf32>
    %c0_13 = arith.constant 0 : index
    %c0_14 = arith.constant 0 : index
    %8 = vector.load %arg9[%c0_13, %c0_14] : memref<1x128xf32, #tpu.memory_space<vmem>>, vector<1x128xf32>
    %9 = vector.broadcast %8 : vector<1x128xf32> to vector<8x128xf32>
    %10 = arith.addf %7, %9 : vector<8x128xf32>
    %c0_15 = arith.constant 0 : index
    %c0_16 = arith.constant 0 : index
    %11 = vector.load %arg1[%c0_15, %c0_16] : memref<8x8xf32, #tpu.memory_space<vmem>>, vector<8x8xf32>
    %c0_17 = arith.constant 0 : index
    %c0_18 = arith.constant 0 : index
    %12 = vector.load %arg10[%c0_17, %c0_18] : memref<8x128xf32, #tpu.memory_space<vmem>>, vector<8x128xf32>
    %cst_19 = arith.constant dense<0.000000e+00> : vector<8x128xf32>
    %13 = tpu.matmul %11, %12, %cst_19 {dimension_numbers = #tpu.dot_dimension_numbers<[1], [0], [0], [1], [0, 0, 1, 1], [], []>} : vector<8x8xf32>, vector<8x128xf32>, vector<8x128xf32> -> vector<8x128xf32>
    %14 = arith.addf %10, %13 : vector<8x128xf32>
    %c0_20 = arith.constant 0 : index
    %c0_21 = arith.constant 0 : index
    %15 = vector.load %arg11[%c0_20, %c0_21] : memref<1x128xf32, #tpu.memory_space<vmem>>, vector<1x128xf32>
    %16 = vector.broadcast %15 : vector<1x128xf32> to vector<8x128xf32>
    %17 = arith.addf %14, %16 : vector<8x128xf32>
    %c0_22 = arith.constant 0 : index
    %c0_23 = arith.constant 0 : index
    %18 = vector.load %arg2[%c0_22, %c0_23] : memref<16x8xf32, #tpu.memory_space<vmem>>, vector<16x8xf32>
    %c0_24 = arith.constant 0 : index
    %c0_25 = arith.constant 0 : index
    %19 = vector.load %arg12[%c0_24, %c0_25] : memref<8x128xf32, #tpu.memory_space<vmem>>, vector<8x128xf32>
    %cst_26 = arith.constant dense<0.000000e+00> : vector<16x128xf32>
    %20 = tpu.matmul %18, %19, %cst_26 {dimension_numbers = #tpu.dot_dimension_numbers<[1], [0], [0], [1], [0, 0, 1, 1], [], []>} : vector<16x8xf32>, vector<8x128xf32>, vector<16x128xf32> -> vector<16x128xf32>
    %c0_27 = arith.constant 0 : index
    %c0_28 = arith.constant 0 : index
    %21 = vector.load %arg13[%c0_27, %c0_28] : memref<1x128xf32, #tpu.memory_space<vmem>>, vector<1x128xf32>
    %22 = vector.broadcast %21 : vector<1x128xf32> to vector<16x128xf32>
    %23 = arith.addf %20, %22 : vector<16x128xf32>
    %c0_29 = arith.constant 0 : index
    %c0_30 = arith.constant 0 : index
    %c0_31 = arith.constant 0 : index
    %c0_32 = arith.constant 0 : index
    %24 = vector.load %arg14[%c0_29, %c0_30, %c0_31, %c0_32] : memref<2x4x128x128xf32, #tpu.memory_space<vmem>>, vector<1x1x128x128xf32>
    %25 = vector.shape_cast %24 : vector<1x1x128x128xf32> to vector<128x128xf32>
    %cst_33 = arith.constant dense<0.000000e+00> : vector<8x128xf32>
    %26 = tpu.matmul %17, %25, %cst_33 {dimension_numbers = #tpu.dot_dimension_numbers<[1], [0], [0], [1], [0, 0, 1, 1], [], []>} : vector<8x128xf32>, vector<128x128xf32>, vector<8x128xf32> -> vector<8x128xf32>
    %c0_34 = arith.constant 0 : index
    %c1 = arith.constant 1 : index
    %c0_35 = arith.constant 0 : index
    %c0_36 = arith.constant 0 : index
    %27 = vector.load %arg14[%c0_34, %c1, %c0_35, %c0_36] : memref<2x4x128x128xf32, #tpu.memory_space<vmem>>, vector<1x1x128x128xf32>
    %28 = vector.shape_cast %27 : vector<1x1x128x128xf32> to vector<128x128xf32>
    %cst_37 = arith.constant dense<0.000000e+00> : vector<8x128xf32>
    %29 = tpu.matmul %17, %28, %cst_37 {dimension_numbers = #tpu.dot_dimension_numbers<[1], [0], [0], [1], [0, 0, 1, 1], [], []>} : vector<8x128xf32>, vector<128x128xf32>, vector<8x128xf32> -> vector<8x128xf32>
    %c0_38 = arith.constant 0 : index
    %c2 = arith.constant 2 : index
    %c0_39 = arith.constant 0 : index
    %c0_40 = arith.constant 0 : index
    %30 = vector.load %arg14[%c0_38, %c2, %c0_39, %c0_40] : memref<2x4x128x128xf32, #tpu.memory_space<vmem>>, vector<1x1x128x128xf32>
    %31 = vector.shape_cast %30 : vector<1x1x128x128xf32> to vector<128x128xf32>
    %cst_41 = arith.constant dense<0.000000e+00> : vector<8x128xf32>
    %32 = tpu.matmul %17, %31, %cst_41 {dimension_numbers = #tpu.dot_dimension_numbers<[1], [0], [0], [1], [0, 0, 1, 1], [], []>} : vector<8x128xf32>, vector<128x128xf32>, vector<8x128xf32> -> vector<8x128xf32>
    %c0_42 = arith.constant 0 : index
    %c3 = arith.constant 3 : index
    %c0_43 = arith.constant 0 : index
    %c0_44 = arith.constant 0 : index
    %33 = vector.load %arg14[%c0_42, %c3, %c0_43, %c0_44] : memref<2x4x128x128xf32, #tpu.memory_space<vmem>>, vector<1x1x128x128xf32>
    %34 = vector.shape_cast %33 : vector<1x1x128x128xf32> to vector<128x128xf32>
    %cst_45 = arith.constant dense<0.000000e+00> : vector<16x128xf32>
    %35 = tpu.matmul %23, %34, %cst_45 {dimension_numbers = #tpu.dot_dimension_numbers<[1], [0], [0], [1], [0, 0, 1, 1], [], []>} : vector<16x128xf32>, vector<128x128xf32>, vector<16x128xf32> -> vector<16x128xf32>
    %cst_46 = arith.constant dense<0.000000e+00> : vector<16x128xf32>
    %36 = tpu.matmul %1, %29, %cst_46 {dimension_numbers = #tpu.dot_dimension_numbers<[1], [0], [0], [1], [0, 0, 1, 1], [], []>} : vector<16x8xf32>, vector<8x128xf32>, vector<16x128xf32> -> vector<16x128xf32>
    %cst_47 = arith.constant dense<0.000000e+00> : vector<16x128xf32>
    %37 = tpu.matmul %2, %26, %cst_47 {dimension_numbers = #tpu.dot_dimension_numbers<[1], [0], [0], [1], [0, 0, 1, 1], [], []>} : vector<16x8xf32>, vector<8x128xf32>, vector<16x128xf32> -> vector<16x128xf32>
    %cst_48 = arith.constant dense<0.000000e+00> : vector<16x128xf32>
    %38 = tpu.matmul %1, %32, %cst_48 {dimension_numbers = #tpu.dot_dimension_numbers<[1], [0], [0], [1], [0, 0, 1, 1], [], []>} : vector<16x8xf32>, vector<8x128xf32>, vector<16x128xf32> -> vector<16x128xf32>
    %39 = arith.mulf %36, %37 : vector<16x128xf32>
    %cst_49 = arith.constant dense<0.000000e+00> : vector<16x128xf32>
    %40 = tpu.matmul %39, %4, %cst_49 {dimension_numbers = #tpu.dot_dimension_numbers<[1], [0], [0], [1], [0, 0, 1, 1], [], []>} : vector<16x128xf32>, vector<128x128xf32>, vector<16x128xf32> -> vector<16x128xf32>
    %cst_50 = arith.constant 0.353553385 : f32
    %41 = vector.broadcast %cst_50 : f32 to vector<16x128xf32>
    %42 = arith.mulf %40, %41 : vector<16x128xf32>
    %43 = arith.mulf %42, %35 : vector<16x128xf32>
    %cst_51 = arith.constant dense<0.000000e+00> : vector<16x128xf32>
    %44 = tpu.matmul %43, %4, %cst_51 {dimension_numbers = #tpu.dot_dimension_numbers<[1], [0], [0], [1], [0, 0, 1, 1], [], []>} : vector<16x128xf32>, vector<128x128xf32>, vector<16x128xf32> -> vector<16x128xf32>
    %cst_52 = arith.constant -5.000000e+00 : f32
    %cst_53 = arith.constant 5.000000e+00 : f32
    %45 = vector.broadcast %cst_52 : f32 to vector<16x128xf32>
    %46 = arith.maximumf %45, %44 : vector<16x128xf32>
    %47 = vector.broadcast %cst_53 : f32 to vector<16x128xf32>
    %48 = arith.minimumf %47, %46 : vector<16x128xf32>
    %49 = math.exp %48 : vector<16x128xf32>
    %50 = arith.mulf %49, %38 : vector<16x128xf32>
    %cst_54 = arith.constant dense<0.000000e+00> : vector<8x128xf32>
    %51 = tpu.matmul %3, %50, %cst_54 {dimension_numbers = #tpu.dot_dimension_numbers<[1], [0], [0], [1], [0, 0, 1, 1], [], []>} : vector<8x16xf32>, vector<16x128xf32>, vector<8x128xf32> -> vector<8x128xf32>
    %cst_55 = arith.constant dense<0.000000e+00> : vector<8x128xf32>
    %52 = tpu.matmul %3, %49, %cst_55 {dimension_numbers = #tpu.dot_dimension_numbers<[1], [0], [0], [1], [0, 0, 1, 1], [], []>} : vector<8x16xf32>, vector<16x128xf32>, vector<8x128xf32> -> vector<8x128xf32>
    %cst_56 = arith.constant 9.99999997E-7 : f32
    %53 = vector.broadcast %cst_56 : f32 to vector<8x128xf32>
    %54 = arith.addf %52, %53 : vector<8x128xf32>
    %55 = tpu.reciprocal %54 {approx = true} : vector<8x128xf32> -> vector<8x128xf32>
    %56 = arith.mulf %51, %55 : vector<8x128xf32>
    %c0_57 = arith.constant 0 : index
    %c0_58 = arith.constant 0 : index
    %c0_59 = arith.constant 0 : index
    %57 = vector.load %arg16[%c0_57, %c0_58, %c0_59] : memref<2x2x128xf32, #tpu.memory_space<vmem>>, vector<1x2x128xf32>
    %58 = vector.shape_cast %57 : vector<1x2x128xf32> to vector<2x128xf32>
    %c0_60 = arith.constant 0 : index
    %c0_61 = arith.constant 0 : index
    %c0_62 = arith.constant 0 : index
    %c0_63 = arith.constant 0 : index
    %59 = vector.load %arg15[%c0_60, %c0_61, %c0_62, %c0_63] : memref<2x2x128x128xf32, #tpu.memory_space<vmem>>, vector<1x1x128x128xf32>
    %60 = vector.shape_cast %59 : vector<1x1x128x128xf32> to vector<128x128xf32>
    %cst_64 = arith.constant dense<0.000000e+00> : vector<8x128xf32>
    %61 = tpu.matmul %56, %60, %cst_64 {dimension_numbers = #tpu.dot_dimension_numbers<[1], [0], [0], [1], [0, 0, 1, 1], [], []>} : vector<8x128xf32>, vector<128x128xf32>, vector<8x128xf32> -> vector<8x128xf32>
    %62 = vector.extract_strided_slice %58 {offsets = [0, 0], sizes = [1, 128], strides = [1, 1]} : vector<2x128xf32> to vector<1x128xf32>
    %63 = vector.broadcast %62 : vector<1x128xf32> to vector<8x128xf32>
    %64 = arith.addf %61, %63 : vector<8x128xf32>
    %c0_65 = arith.constant 0 : index
    %c1_66 = arith.constant 1 : index
    %c0_67 = arith.constant 0 : index
    %c0_68 = arith.constant 0 : index
    %65 = vector.load %arg15[%c0_65, %c1_66, %c0_67, %c0_68] : memref<2x2x128x128xf32, #tpu.memory_space<vmem>>, vector<1x1x128x128xf32>
    %66 = vector.shape_cast %65 : vector<1x1x128x128xf32> to vector<128x128xf32>
    %cst_69 = arith.constant dense<0.000000e+00> : vector<16x128xf32>
    %67 = tpu.matmul %43, %66, %cst_69 {dimension_numbers = #tpu.dot_dimension_numbers<[1], [0], [0], [1], [0, 0, 1, 1], [], []>} : vector<16x128xf32>, vector<128x128xf32>, vector<16x128xf32> -> vector<16x128xf32>
    %68 = vector.extract_strided_slice %58 {offsets = [1, 0], sizes = [1, 128], strides = [1, 1]} : vector<2x128xf32> to vector<1x128xf32>
    %69 = vector.broadcast %68 : vector<1x128xf32> to vector<16x128xf32>
    %70 = arith.addf %67, %69 : vector<16x128xf32>
    %c0_70 = arith.constant 0 : index
    %c0_71 = arith.constant 0 : index
    %c0_72 = arith.constant 0 : index
    %71 = vector.load %arg17[%c0_70, %c0_71, %c0_72] : memref<2x4x128xf32, #tpu.memory_space<vmem>>, vector<1x4x128xf32>
    %72 = vector.shape_cast %71 : vector<1x4x128xf32> to vector<4x128xf32>
    %73 = arith.addf %17, %64 : vector<8x128xf32>
    %74 = vector.extract_strided_slice %72 {offsets = [0, 0], sizes = [1, 128], strides = [1, 1]} : vector<4x128xf32> to vector<1x128xf32>
    %75 = vector.extract_strided_slice %72 {offsets = [1, 0], sizes = [1, 128], strides = [1, 1]} : vector<4x128xf32> to vector<1x128xf32>
    %cst_73 = arith.constant dense<0.000000e+00> : vector<8xf32>
    %76 = vector.multi_reduction <add>, %73, %cst_73 [1] : vector<8x128xf32> to vector<8xf32>
    %77 = vector.shape_cast %76 : vector<8xf32> to vector<8x1xf32>
    %cst_74 = arith.constant 3.125000e-02 : f32
    %78 = vector.broadcast %cst_74 : f32 to vector<8x1xf32>
    %79 = arith.mulf %77, %78 : vector<8x1xf32>
    %80 = vector.broadcast %79 : vector<8x1xf32> to vector<8x128xf32>
    %81 = arith.subf %73, %80 : vector<8x128xf32>
    %82 = vector.broadcast %0 : vector<1x128xf32> to vector<8x128xf32>
    %83 = arith.mulf %81, %82 : vector<8x128xf32>
    %84 = arith.mulf %83, %83 : vector<8x128xf32>
    %cst_75 = arith.constant dense<0.000000e+00> : vector<8xf32>
    %85 = vector.multi_reduction <add>, %84, %cst_75 [1] : vector<8x128xf32> to vector<8xf32>
    %86 = vector.shape_cast %85 : vector<8xf32> to vector<8x1xf32>
    %cst_76 = arith.constant 3.125000e-02 : f32
    %87 = vector.broadcast %cst_76 : f32 to vector<8x1xf32>
    %88 = arith.mulf %86, %87 : vector<8x1xf32>
    %cst_77 = arith.constant 9.99999974E-6 : f32
    %89 = vector.broadcast %cst_77 : f32 to vector<8x1xf32>
    %90 = arith.addf %88, %89 : vector<8x1xf32>
    %91 = math.rsqrt %90 : vector<8x1xf32>
    %92 = vector.broadcast %91 : vector<8x1xf32> to vector<8x128xf32>
    %93 = arith.mulf %83, %92 : vector<8x128xf32>
    %94 = vector.broadcast %74 : vector<1x128xf32> to vector<8x128xf32>
    %95 = arith.mulf %93, %94 : vector<8x128xf32>
    %96 = vector.broadcast %75 : vector<1x128xf32> to vector<8x128xf32>
    %97 = arith.addf %95, %96 : vector<8x128xf32>
    %98 = arith.addf %23, %70 : vector<16x128xf32>
    %99 = vector.extract_strided_slice %72 {offsets = [2, 0], sizes = [1, 128], strides = [1, 1]} : vector<4x128xf32> to vector<1x128xf32>
    %100 = vector.extract_strided_slice %72 {offsets = [3, 0], sizes = [1, 128], strides = [1, 1]} : vector<4x128xf32> to vector<1x128xf32>
    %cst_78 = arith.constant dense<0.000000e+00> : vector<16xf32>
    %101 = vector.multi_reduction <add>, %98, %cst_78 [1] : vector<16x128xf32> to vector<16xf32>
    %102 = vector.shape_cast %101 : vector<16xf32> to vector<16x1xf32>
    %cst_79 = arith.constant 3.125000e-02 : f32
    %103 = vector.broadcast %cst_79 : f32 to vector<16x1xf32>
    %104 = arith.mulf %102, %103 : vector<16x1xf32>
    %105 = vector.broadcast %104 : vector<16x1xf32> to vector<16x128xf32>
    %106 = arith.subf %98, %105 : vector<16x128xf32>
    %107 = vector.broadcast %0 : vector<1x128xf32> to vector<16x128xf32>
    %108 = arith.mulf %106, %107 : vector<16x128xf32>
    %109 = arith.mulf %108, %108 : vector<16x128xf32>
    %cst_80 = arith.constant dense<0.000000e+00> : vector<16xf32>
    %110 = vector.multi_reduction <add>, %109, %cst_80 [1] : vector<16x128xf32> to vector<16xf32>
    %111 = vector.shape_cast %110 : vector<16xf32> to vector<16x1xf32>
    %cst_81 = arith.constant 3.125000e-02 : f32
    %112 = vector.broadcast %cst_81 : f32 to vector<16x1xf32>
    %113 = arith.mulf %111, %112 : vector<16x1xf32>
    %cst_82 = arith.constant 9.99999974E-6 : f32
    %114 = vector.broadcast %cst_82 : f32 to vector<16x1xf32>
    %115 = arith.addf %113, %114 : vector<16x1xf32>
    %116 = math.rsqrt %115 : vector<16x1xf32>
    %117 = vector.broadcast %116 : vector<16x1xf32> to vector<16x128xf32>
    %118 = arith.mulf %108, %117 : vector<16x128xf32>
    %119 = vector.broadcast %99 : vector<1x128xf32> to vector<16x128xf32>
    %120 = arith.mulf %118, %119 : vector<16x128xf32>
    %121 = vector.broadcast %100 : vector<1x128xf32> to vector<16x128xf32>
    %122 = arith.addf %120, %121 : vector<16x128xf32>
    %c0_83 = arith.constant 0 : index
    %c0_84 = arith.constant 0 : index
    %c0_85 = arith.constant 0 : index
    %123 = vector.load %arg19[%c0_83, %c0_84, %c0_85] : memref<2x2x128xf32, #tpu.memory_space<vmem>>, vector<1x2x128xf32>
    %124 = vector.shape_cast %123 : vector<1x2x128xf32> to vector<2x128xf32>
    %c0_86 = arith.constant 0 : index
    %c0_87 = arith.constant 0 : index
    %c0_88 = arith.constant 0 : index
    %125 = vector.load %arg21[%c0_86, %c0_87, %c0_88] : memref<2x2x128xf32, #tpu.memory_space<vmem>>, vector<1x2x128xf32>
    %126 = vector.shape_cast %125 : vector<1x2x128xf32> to vector<2x128xf32>
    %c0_89 = arith.constant 0 : index
    %c0_90 = arith.constant 0 : index
    %c0_91 = arith.constant 0 : index
    %127 = vector.load %arg22[%c0_89, %c0_90, %c0_91] : memref<2x4x128xf32, #tpu.memory_space<vmem>>, vector<1x4x128xf32>
    %128 = vector.shape_cast %127 : vector<1x4x128xf32> to vector<4x128xf32>
    %c0_92 = arith.constant 0 : index
    %c0_93 = arith.constant 0 : index
    %c0_94 = arith.constant 0 : index
    %c0_95 = arith.constant 0 : index
    %129 = vector.load %arg18[%c0_92, %c0_93, %c0_94, %c0_95] : memref<2x2x128x128xf32, #tpu.memory_space<vmem>>, vector<1x1x128x128xf32>
    %130 = vector.shape_cast %129 : vector<1x1x128x128xf32> to vector<128x128xf32>
    %cst_96 = arith.constant dense<0.000000e+00> : vector<8x128xf32>
    %131 = tpu.matmul %97, %130, %cst_96 {dimension_numbers = #tpu.dot_dimension_numbers<[1], [0], [0], [1], [0, 0, 1, 1], [], []>} : vector<8x128xf32>, vector<128x128xf32>, vector<8x128xf32> -> vector<8x128xf32>
    %132 = vector.extract_strided_slice %124 {offsets = [0, 0], sizes = [1, 128], strides = [1, 1]} : vector<2x128xf32> to vector<1x128xf32>
    %133 = vector.broadcast %132 : vector<1x128xf32> to vector<8x128xf32>
    %134 = arith.addf %131, %133 : vector<8x128xf32>
    %cst_97 = arith.constant 0.000000e+00 : f32
    %135 = vector.broadcast %cst_97 : f32 to vector<8x128xf32>
    %136 = arith.maximumf %134, %135 : vector<8x128xf32>
    %c0_98 = arith.constant 0 : index
    %c0_99 = arith.constant 0 : index
    %c0_100 = arith.constant 0 : index
    %c0_101 = arith.constant 0 : index
    %137 = vector.load %arg20[%c0_98, %c0_99, %c0_100, %c0_101] : memref<2x2x128x128xf32, #tpu.memory_space<vmem>>, vector<1x1x128x128xf32>
    %138 = vector.shape_cast %137 : vector<1x1x128x128xf32> to vector<128x128xf32>
    %cst_102 = arith.constant dense<0.000000e+00> : vector<8x128xf32>
    %139 = tpu.matmul %136, %138, %cst_102 {dimension_numbers = #tpu.dot_dimension_numbers<[1], [0], [0], [1], [0, 0, 1, 1], [], []>} : vector<8x128xf32>, vector<128x128xf32>, vector<8x128xf32> -> vector<8x128xf32>
    %140 = vector.extract_strided_slice %126 {offsets = [0, 0], sizes = [1, 128], strides = [1, 1]} : vector<2x128xf32> to vector<1x128xf32>
    %141 = vector.broadcast %140 : vector<1x128xf32> to vector<8x128xf32>
    %142 = arith.addf %139, %141 : vector<8x128xf32>
    %143 = arith.addf %97, %142 : vector<8x128xf32>
    %144 = vector.extract_strided_slice %128 {offsets = [0, 0], sizes = [1, 128], strides = [1, 1]} : vector<4x128xf32> to vector<1x128xf32>
    %145 = vector.extract_strided_slice %128 {offsets = [1, 0], sizes = [1, 128], strides = [1, 1]} : vector<4x128xf32> to vector<1x128xf32>
    %cst_103 = arith.constant dense<0.000000e+00> : vector<8xf32>
    %146 = vector.multi_reduction <add>, %143, %cst_103 [1] : vector<8x128xf32> to vector<8xf32>
    %147 = vector.shape_cast %146 : vector<8xf32> to vector<8x1xf32>
    %cst_104 = arith.constant 3.125000e-02 : f32
    %148 = vector.broadcast %cst_104 : f32 to vector<8x1xf32>
    %149 = arith.mulf %147, %148 : vector<8x1xf32>
    %150 = vector.broadcast %149 : vector<8x1xf32> to vector<8x128xf32>
    %151 = arith.subf %143, %150 : vector<8x128xf32>
    %152 = vector.broadcast %0 : vector<1x128xf32> to vector<8x128xf32>
    %153 = arith.mulf %151, %152 : vector<8x128xf32>
    %154 = arith.mulf %153, %153 : vector<8x128xf32>
    %cst_105 = arith.constant dense<0.000000e+00> : vector<8xf32>
    %155 = vector.multi_reduction <add>, %154, %cst_105 [1] : vector<8x128xf32> to vector<8xf32>
    %156 = vector.shape_cast %155 : vector<8xf32> to vector<8x1xf32>
    %cst_106 = arith.constant 3.125000e-02 : f32
    %157 = vector.broadcast %cst_106 : f32 to vector<8x1xf32>
    %158 = arith.mulf %156, %157 : vector<8x1xf32>
    %cst_107 = arith.constant 9.99999974E-6 : f32
    %159 = vector.broadcast %cst_107 : f32 to vector<8x1xf32>
    %160 = arith.addf %158, %159 : vector<8x1xf32>
    %161 = math.rsqrt %160 : vector<8x1xf32>
    %162 = vector.broadcast %161 : vector<8x1xf32> to vector<8x128xf32>
    %163 = arith.mulf %153, %162 : vector<8x128xf32>
    %164 = vector.broadcast %144 : vector<1x128xf32> to vector<8x128xf32>
    %165 = arith.mulf %163, %164 : vector<8x128xf32>
    %166 = vector.broadcast %145 : vector<1x128xf32> to vector<8x128xf32>
    %167 = arith.addf %165, %166 : vector<8x128xf32>
    %c0_108 = arith.constant 0 : index
    %c1_109 = arith.constant 1 : index
    %c0_110 = arith.constant 0 : index
    %c0_111 = arith.constant 0 : index
    %168 = vector.load %arg18[%c0_108, %c1_109, %c0_110, %c0_111] : memref<2x2x128x128xf32, #tpu.memory_space<vmem>>, vector<1x1x128x128xf32>
    %169 = vector.shape_cast %168 : vector<1x1x128x128xf32> to vector<128x128xf32>
    %cst_112 = arith.constant dense<0.000000e+00> : vector<16x128xf32>
    %170 = tpu.matmul %122, %169, %cst_112 {dimension_numbers = #tpu.dot_dimension_numbers<[1], [0], [0], [1], [0, 0, 1, 1], [], []>} : vector<16x128xf32>, vector<128x128xf32>, vector<16x128xf32> -> vector<16x128xf32>
    %171 = vector.extract_strided_slice %124 {offsets = [1, 0], sizes = [1, 128], strides = [1, 1]} : vector<2x128xf32> to vector<1x128xf32>
    %172 = vector.broadcast %171 : vector<1x128xf32> to vector<16x128xf32>
    %173 = arith.addf %170, %172 : vector<16x128xf32>
    %cst_113 = arith.constant 0.000000e+00 : f32
    %174 = vector.broadcast %cst_113 : f32 to vector<16x128xf32>
    %175 = arith.maximumf %173, %174 : vector<16x128xf32>
    %c0_114 = arith.constant 0 : index
    %c1_115 = arith.constant 1 : index
    %c0_116 = arith.constant 0 : index
    %c0_117 = arith.constant 0 : index
    %176 = vector.load %arg20[%c0_114, %c1_115, %c0_116, %c0_117] : memref<2x2x128x128xf32, #tpu.memory_space<vmem>>, vector<1x1x128x128xf32>
    %177 = vector.shape_cast %176 : vector<1x1x128x128xf32> to vector<128x128xf32>
    %cst_118 = arith.constant dense<0.000000e+00> : vector<16x128xf32>
    %178 = tpu.matmul %175, %177, %cst_118 {dimension_numbers = #tpu.dot_dimension_numbers<[1], [0], [0], [1], [0, 0, 1, 1], [], []>} : vector<16x128xf32>, vector<128x128xf32>, vector<16x128xf32> -> vector<16x128xf32>
    %179 = vector.extract_strided_slice %126 {offsets = [1, 0], sizes = [1, 128], strides = [1, 1]} : vector<2x128xf32> to vector<1x128xf32>
    %180 = vector.broadcast %179 : vector<1x128xf32> to vector<16x128xf32>
    %181 = arith.addf %178, %180 : vector<16x128xf32>
    %182 = arith.addf %122, %181 : vector<16x128xf32>
    %183 = vector.extract_strided_slice %128 {offsets = [2, 0], sizes = [1, 128], strides = [1, 1]} : vector<4x128xf32> to vector<1x128xf32>
    %184 = vector.extract_strided_slice %128 {offsets = [3, 0], sizes = [1, 128], strides = [1, 1]} : vector<4x128xf32> to vector<1x128xf32>
    %cst_119 = arith.constant dense<0.000000e+00> : vector<16xf32>
    %185 = vector.multi_reduction <add>, %182, %cst_119 [1] : vector<16x128xf32> to vector<16xf32>
    %186 = vector.shape_cast %185 : vector<16xf32> to vector<16x1xf32>
    %cst_120 = arith.constant 3.125000e-02 : f32
    %187 = vector.broadcast %cst_120 : f32 to vector<16x1xf32>
    %188 = arith.mulf %186, %187 : vector<16x1xf32>
    %189 = vector.broadcast %188 : vector<16x1xf32> to vector<16x128xf32>
    %190 = arith.subf %182, %189 : vector<16x128xf32>
    %191 = vector.broadcast %0 : vector<1x128xf32> to vector<16x128xf32>
    %192 = arith.mulf %190, %191 : vector<16x128xf32>
    %193 = arith.mulf %192, %192 : vector<16x128xf32>
    %cst_121 = arith.constant dense<0.000000e+00> : vector<16xf32>
    %194 = vector.multi_reduction <add>, %193, %cst_121 [1] : vector<16x128xf32> to vector<16xf32>
    %195 = vector.shape_cast %194 : vector<16xf32> to vector<16x1xf32>
    %cst_122 = arith.constant 3.125000e-02 : f32
    %196 = vector.broadcast %cst_122 : f32 to vector<16x1xf32>
    %197 = arith.mulf %195, %196 : vector<16x1xf32>
    %cst_123 = arith.constant 9.99999974E-6 : f32
    %198 = vector.broadcast %cst_123 : f32 to vector<16x1xf32>
    %199 = arith.addf %197, %198 : vector<16x1xf32>
    %200 = math.rsqrt %199 : vector<16x1xf32>
    %201 = vector.broadcast %200 : vector<16x1xf32> to vector<16x128xf32>
    %202 = arith.mulf %192, %201 : vector<16x128xf32>
    %203 = vector.broadcast %183 : vector<1x128xf32> to vector<16x128xf32>
    %204 = arith.mulf %202, %203 : vector<16x128xf32>
    %205 = vector.broadcast %184 : vector<1x128xf32> to vector<16x128xf32>
    %206 = arith.addf %204, %205 : vector<16x128xf32>
    %c0_124 = arith.constant 0 : index
    %c0_125 = arith.constant 0 : index
    %c0_126 = arith.constant 0 : index
    %207 = vector.load %arg23[%c0_124, %c0_125, %c0_126] : memref<2x4x128xf32, #tpu.memory_space<vmem>>, vector<1x4x128xf32>
    %208 = vector.shape_cast %207 : vector<1x4x128xf32> to vector<4x128xf32>
    %209 = vector.extract_strided_slice %208 {offsets = [2, 0], sizes = [1, 128], strides = [1, 1]} : vector<4x128xf32> to vector<1x128xf32>
    %210 = vector.broadcast %209 : vector<1x128xf32> to vector<8x128xf32>
    %211 = arith.subf %167, %210 : vector<8x128xf32>
    %212 = vector.extract_strided_slice %208 {offsets = [3, 0], sizes = [1, 128], strides = [1, 1]} : vector<4x128xf32> to vector<1x128xf32>
    %cst_127 = arith.constant 9.99999974E-6 : f32
    %213 = vector.broadcast %cst_127 : f32 to vector<1x128xf32>
    %214 = arith.addf %212, %213 : vector<1x128xf32>
    %215 = math.rsqrt %214 : vector<1x128xf32>
    %216 = vector.broadcast %215 : vector<1x128xf32> to vector<8x128xf32>
    %217 = arith.mulf %211, %216 : vector<8x128xf32>
    %218 = vector.extract_strided_slice %208 {offsets = [0, 0], sizes = [1, 128], strides = [1, 1]} : vector<4x128xf32> to vector<1x128xf32>
    %219 = vector.broadcast %218 : vector<1x128xf32> to vector<8x128xf32>
    %220 = arith.mulf %217, %219 : vector<8x128xf32>
    %221 = vector.extract_strided_slice %208 {offsets = [1, 0], sizes = [1, 128], strides = [1, 1]} : vector<4x128xf32> to vector<1x128xf32>
    %222 = vector.broadcast %221 : vector<1x128xf32> to vector<8x128xf32>
    %223 = arith.addf %220, %222 : vector<8x128xf32>
    %c1_128 = arith.constant 1 : index
    %c0_129 = arith.constant 0 : index
    %c0_130 = arith.constant 0 : index
    %c0_131 = arith.constant 0 : index
    %224 = vector.load %arg14[%c1_128, %c0_129, %c0_130, %c0_131] : memref<2x4x128x128xf32, #tpu.memory_space<vmem>>, vector<1x1x128x128xf32>
    %225 = vector.shape_cast %224 : vector<1x1x128x128xf32> to vector<128x128xf32>
    %cst_132 = arith.constant dense<0.000000e+00> : vector<8x128xf32>
    %226 = tpu.matmul %223, %225, %cst_132 {dimension_numbers = #tpu.dot_dimension_numbers<[1], [0], [0], [1], [0, 0, 1, 1], [], []>} : vector<8x128xf32>, vector<128x128xf32>, vector<8x128xf32> -> vector<8x128xf32>
    %c1_133 = arith.constant 1 : index
    %c1_134 = arith.constant 1 : index
    %c0_135 = arith.constant 0 : index
    %c0_136 = arith.constant 0 : index
    %227 = vector.load %arg14[%c1_133, %c1_134, %c0_135, %c0_136] : memref<2x4x128x128xf32, #tpu.memory_space<vmem>>, vector<1x1x128x128xf32>
    %228 = vector.shape_cast %227 : vector<1x1x128x128xf32> to vector<128x128xf32>
    %cst_137 = arith.constant dense<0.000000e+00> : vector<8x128xf32>
    %229 = tpu.matmul %223, %228, %cst_137 {dimension_numbers = #tpu.dot_dimension_numbers<[1], [0], [0], [1], [0, 0, 1, 1], [], []>} : vector<8x128xf32>, vector<128x128xf32>, vector<8x128xf32> -> vector<8x128xf32>
    %c1_138 = arith.constant 1 : index
    %c2_139 = arith.constant 2 : index
    %c0_140 = arith.constant 0 : index
    %c0_141 = arith.constant 0 : index
    %230 = vector.load %arg14[%c1_138, %c2_139, %c0_140, %c0_141] : memref<2x4x128x128xf32, #tpu.memory_space<vmem>>, vector<1x1x128x128xf32>
    %231 = vector.shape_cast %230 : vector<1x1x128x128xf32> to vector<128x128xf32>
    %cst_142 = arith.constant dense<0.000000e+00> : vector<8x128xf32>
    %232 = tpu.matmul %223, %231, %cst_142 {dimension_numbers = #tpu.dot_dimension_numbers<[1], [0], [0], [1], [0, 0, 1, 1], [], []>} : vector<8x128xf32>, vector<128x128xf32>, vector<8x128xf32> -> vector<8x128xf32>
    %c1_143 = arith.constant 1 : index
    %c3_144 = arith.constant 3 : index
    %c0_145 = arith.constant 0 : index
    %c0_146 = arith.constant 0 : index
    %233 = vector.load %arg14[%c1_143, %c3_144, %c0_145, %c0_146] : memref<2x4x128x128xf32, #tpu.memory_space<vmem>>, vector<1x1x128x128xf32>
    %234 = vector.shape_cast %233 : vector<1x1x128x128xf32> to vector<128x128xf32>
    %cst_147 = arith.constant dense<0.000000e+00> : vector<16x128xf32>
    %235 = tpu.matmul %206, %234, %cst_147 {dimension_numbers = #tpu.dot_dimension_numbers<[1], [0], [0], [1], [0, 0, 1, 1], [], []>} : vector<16x128xf32>, vector<128x128xf32>, vector<16x128xf32> -> vector<16x128xf32>
    %cst_148 = arith.constant dense<0.000000e+00> : vector<16x128xf32>
    %236 = tpu.matmul %1, %229, %cst_148 {dimension_numbers = #tpu.dot_dimension_numbers<[1], [0], [0], [1], [0, 0, 1, 1], [], []>} : vector<16x8xf32>, vector<8x128xf32>, vector<16x128xf32> -> vector<16x128xf32>
    %cst_149 = arith.constant dense<0.000000e+00> : vector<16x128xf32>
    %237 = tpu.matmul %2, %226, %cst_149 {dimension_numbers = #tpu.dot_dimension_numbers<[1], [0], [0], [1], [0, 0, 1, 1], [], []>} : vector<16x8xf32>, vector<8x128xf32>, vector<16x128xf32> -> vector<16x128xf32>
    %cst_150 = arith.constant dense<0.000000e+00> : vector<16x128xf32>
    %238 = tpu.matmul %1, %232, %cst_150 {dimension_numbers = #tpu.dot_dimension_numbers<[1], [0], [0], [1], [0, 0, 1, 1], [], []>} : vector<16x8xf32>, vector<8x128xf32>, vector<16x128xf32> -> vector<16x128xf32>
    %239 = arith.mulf %236, %237 : vector<16x128xf32>
    %cst_151 = arith.constant dense<0.000000e+00> : vector<16x128xf32>
    %240 = tpu.matmul %239, %4, %cst_151 {dimension_numbers = #tpu.dot_dimension_numbers<[1], [0], [0], [1], [0, 0, 1, 1], [], []>} : vector<16x128xf32>, vector<128x128xf32>, vector<16x128xf32> -> vector<16x128xf32>
    %cst_152 = arith.constant 0.353553385 : f32
    %241 = vector.broadcast %cst_152 : f32 to vector<16x128xf32>
    %242 = arith.mulf %240, %241 : vector<16x128xf32>
    %243 = arith.mulf %242, %235 : vector<16x128xf32>
    %cst_153 = arith.constant dense<0.000000e+00> : vector<16x128xf32>
    %244 = tpu.matmul %243, %4, %cst_153 {dimension_numbers = #tpu.dot_dimension_numbers<[1], [0], [0], [1], [0, 0, 1, 1], [], []>} : vector<16x128xf32>, vector<128x128xf32>, vector<16x128xf32> -> vector<16x128xf32>
    %cst_154 = arith.constant -5.000000e+00 : f32
    %cst_155 = arith.constant 5.000000e+00 : f32
    %245 = vector.broadcast %cst_154 : f32 to vector<16x128xf32>
    %246 = arith.maximumf %245, %244 : vector<16x128xf32>
    %247 = vector.broadcast %cst_155 : f32 to vector<16x128xf32>
    %248 = arith.minimumf %247, %246 : vector<16x128xf32>
    %249 = math.exp %248 : vector<16x128xf32>
    %250 = arith.mulf %249, %238 : vector<16x128xf32>
    %cst_156 = arith.constant dense<0.000000e+00> : vector<8x128xf32>
    %251 = tpu.matmul %3, %250, %cst_156 {dimension_numbers = #tpu.dot_dimension_numbers<[1], [0], [0], [1], [0, 0, 1, 1], [], []>} : vector<8x16xf32>, vector<16x128xf32>, vector<8x128xf32> -> vector<8x128xf32>
    %cst_157 = arith.constant dense<0.000000e+00> : vector<8x128xf32>
    %252 = tpu.matmul %3, %249, %cst_157 {dimension_numbers = #tpu.dot_dimension_numbers<[1], [0], [0], [1], [0, 0, 1, 1], [], []>} : vector<8x16xf32>, vector<16x128xf32>, vector<8x128xf32> -> vector<8x128xf32>
    %cst_158 = arith.constant 9.99999997E-7 : f32
    %253 = vector.broadcast %cst_158 : f32 to vector<8x128xf32>
    %254 = arith.addf %252, %253 : vector<8x128xf32>
    %255 = tpu.reciprocal %254 {approx = true} : vector<8x128xf32> -> vector<8x128xf32>
    %256 = arith.mulf %251, %255 : vector<8x128xf32>
    %c1_159 = arith.constant 1 : index
    %c0_160 = arith.constant 0 : index
    %c0_161 = arith.constant 0 : index
    %257 = vector.load %arg16[%c1_159, %c0_160, %c0_161] : memref<2x2x128xf32, #tpu.memory_space<vmem>>, vector<1x2x128xf32>
    %258 = vector.shape_cast %257 : vector<1x2x128xf32> to vector<2x128xf32>
    %c1_162 = arith.constant 1 : index
    %c0_163 = arith.constant 0 : index
    %c0_164 = arith.constant 0 : index
    %c0_165 = arith.constant 0 : index
    %259 = vector.load %arg15[%c1_162, %c0_163, %c0_164, %c0_165] : memref<2x2x128x128xf32, #tpu.memory_space<vmem>>, vector<1x1x128x128xf32>
    %260 = vector.shape_cast %259 : vector<1x1x128x128xf32> to vector<128x128xf32>
    %cst_166 = arith.constant dense<0.000000e+00> : vector<8x128xf32>
    %261 = tpu.matmul %256, %260, %cst_166 {dimension_numbers = #tpu.dot_dimension_numbers<[1], [0], [0], [1], [0, 0, 1, 1], [], []>} : vector<8x128xf32>, vector<128x128xf32>, vector<8x128xf32> -> vector<8x128xf32>
    %262 = vector.extract_strided_slice %258 {offsets = [0, 0], sizes = [1, 128], strides = [1, 1]} : vector<2x128xf32> to vector<1x128xf32>
    %263 = vector.broadcast %262 : vector<1x128xf32> to vector<8x128xf32>
    %264 = arith.addf %261, %263 : vector<8x128xf32>
    %c1_167 = arith.constant 1 : index
    %c0_168 = arith.constant 0 : index
    %c0_169 = arith.constant 0 : index
    %265 = vector.load %arg17[%c1_167, %c0_168, %c0_169] : memref<2x4x128xf32, #tpu.memory_space<vmem>>, vector<1x4x128xf32>
    %266 = vector.shape_cast %265 : vector<1x4x128xf32> to vector<4x128xf32>
    %267 = arith.addf %223, %264 : vector<8x128xf32>
    %268 = vector.extract_strided_slice %266 {offsets = [0, 0], sizes = [1, 128], strides = [1, 1]} : vector<4x128xf32> to vector<1x128xf32>
    %269 = vector.extract_strided_slice %266 {offsets = [1, 0], sizes = [1, 128], strides = [1, 1]} : vector<4x128xf32> to vector<1x128xf32>
    %cst_170 = arith.constant dense<0.000000e+00> : vector<8xf32>
    %270 = vector.multi_reduction <add>, %267, %cst_170 [1] : vector<8x128xf32> to vector<8xf32>
    %271 = vector.shape_cast %270 : vector<8xf32> to vector<8x1xf32>
    %cst_171 = arith.constant 3.125000e-02 : f32
    %272 = vector.broadcast %cst_171 : f32 to vector<8x1xf32>
    %273 = arith.mulf %271, %272 : vector<8x1xf32>
    %274 = vector.broadcast %273 : vector<8x1xf32> to vector<8x128xf32>
    %275 = arith.subf %267, %274 : vector<8x128xf32>
    %276 = vector.broadcast %0 : vector<1x128xf32> to vector<8x128xf32>
    %277 = arith.mulf %275, %276 : vector<8x128xf32>
    %278 = arith.mulf %277, %277 : vector<8x128xf32>
    %cst_172 = arith.constant dense<0.000000e+00> : vector<8xf32>
    %279 = vector.multi_reduction <add>, %278, %cst_172 [1] : vector<8x128xf32> to vector<8xf32>
    %280 = vector.shape_cast %279 : vector<8xf32> to vector<8x1xf32>
    %cst_173 = arith.constant 3.125000e-02 : f32
    %281 = vector.broadcast %cst_173 : f32 to vector<8x1xf32>
    %282 = arith.mulf %280, %281 : vector<8x1xf32>
    %cst_174 = arith.constant 9.99999974E-6 : f32
    %283 = vector.broadcast %cst_174 : f32 to vector<8x1xf32>
    %284 = arith.addf %282, %283 : vector<8x1xf32>
    %285 = math.rsqrt %284 : vector<8x1xf32>
    %286 = vector.broadcast %285 : vector<8x1xf32> to vector<8x128xf32>
    %287 = arith.mulf %277, %286 : vector<8x128xf32>
    %288 = vector.broadcast %268 : vector<1x128xf32> to vector<8x128xf32>
    %289 = arith.mulf %287, %288 : vector<8x128xf32>
    %290 = vector.broadcast %269 : vector<1x128xf32> to vector<8x128xf32>
    %291 = arith.addf %289, %290 : vector<8x128xf32>
    %c1_175 = arith.constant 1 : index
    %c0_176 = arith.constant 0 : index
    %c0_177 = arith.constant 0 : index
    %292 = vector.load %arg19[%c1_175, %c0_176, %c0_177] : memref<2x2x128xf32, #tpu.memory_space<vmem>>, vector<1x2x128xf32>
    %293 = vector.shape_cast %292 : vector<1x2x128xf32> to vector<2x128xf32>
    %c1_178 = arith.constant 1 : index
    %c0_179 = arith.constant 0 : index
    %c0_180 = arith.constant 0 : index
    %294 = vector.load %arg21[%c1_178, %c0_179, %c0_180] : memref<2x2x128xf32, #tpu.memory_space<vmem>>, vector<1x2x128xf32>
    %295 = vector.shape_cast %294 : vector<1x2x128xf32> to vector<2x128xf32>
    %c1_181 = arith.constant 1 : index
    %c0_182 = arith.constant 0 : index
    %c0_183 = arith.constant 0 : index
    %296 = vector.load %arg22[%c1_181, %c0_182, %c0_183] : memref<2x4x128xf32, #tpu.memory_space<vmem>>, vector<1x4x128xf32>
    %297 = vector.shape_cast %296 : vector<1x4x128xf32> to vector<4x128xf32>
    %c1_184 = arith.constant 1 : index
    %c0_185 = arith.constant 0 : index
    %c0_186 = arith.constant 0 : index
    %c0_187 = arith.constant 0 : index
    %298 = vector.load %arg18[%c1_184, %c0_185, %c0_186, %c0_187] : memref<2x2x128x128xf32, #tpu.memory_space<vmem>>, vector<1x1x128x128xf32>
    %299 = vector.shape_cast %298 : vector<1x1x128x128xf32> to vector<128x128xf32>
    %cst_188 = arith.constant dense<0.000000e+00> : vector<8x128xf32>
    %300 = tpu.matmul %291, %299, %cst_188 {dimension_numbers = #tpu.dot_dimension_numbers<[1], [0], [0], [1], [0, 0, 1, 1], [], []>} : vector<8x128xf32>, vector<128x128xf32>, vector<8x128xf32> -> vector<8x128xf32>
    %301 = vector.extract_strided_slice %293 {offsets = [0, 0], sizes = [1, 128], strides = [1, 1]} : vector<2x128xf32> to vector<1x128xf32>
    %302 = vector.broadcast %301 : vector<1x128xf32> to vector<8x128xf32>
    %303 = arith.addf %300, %302 : vector<8x128xf32>
    %cst_189 = arith.constant 0.000000e+00 : f32
    %304 = vector.broadcast %cst_189 : f32 to vector<8x128xf32>
    %305 = arith.maximumf %303, %304 : vector<8x128xf32>
    %c1_190 = arith.constant 1 : index
    %c0_191 = arith.constant 0 : index
    %c0_192 = arith.constant 0 : index
    %c0_193 = arith.constant 0 : index
    %306 = vector.load %arg20[%c1_190, %c0_191, %c0_192, %c0_193] : memref<2x2x128x128xf32, #tpu.memory_space<vmem>>, vector<1x1x128x128xf32>
    %307 = vector.shape_cast %306 : vector<1x1x128x128xf32> to vector<128x128xf32>
    %cst_194 = arith.constant dense<0.000000e+00> : vector<8x128xf32>
    %308 = tpu.matmul %305, %307, %cst_194 {dimension_numbers = #tpu.dot_dimension_numbers<[1], [0], [0], [1], [0, 0, 1, 1], [], []>} : vector<8x128xf32>, vector<128x128xf32>, vector<8x128xf32> -> vector<8x128xf32>
    %309 = vector.extract_strided_slice %295 {offsets = [0, 0], sizes = [1, 128], strides = [1, 1]} : vector<2x128xf32> to vector<1x128xf32>
    %310 = vector.broadcast %309 : vector<1x128xf32> to vector<8x128xf32>
    %311 = arith.addf %308, %310 : vector<8x128xf32>
    %312 = arith.addf %291, %311 : vector<8x128xf32>
    %313 = vector.extract_strided_slice %297 {offsets = [0, 0], sizes = [1, 128], strides = [1, 1]} : vector<4x128xf32> to vector<1x128xf32>
    %314 = vector.extract_strided_slice %297 {offsets = [1, 0], sizes = [1, 128], strides = [1, 1]} : vector<4x128xf32> to vector<1x128xf32>
    %cst_195 = arith.constant dense<0.000000e+00> : vector<8xf32>
    %315 = vector.multi_reduction <add>, %312, %cst_195 [1] : vector<8x128xf32> to vector<8xf32>
    %316 = vector.shape_cast %315 : vector<8xf32> to vector<8x1xf32>
    %cst_196 = arith.constant 3.125000e-02 : f32
    %317 = vector.broadcast %cst_196 : f32 to vector<8x1xf32>
    %318 = arith.mulf %316, %317 : vector<8x1xf32>
    %319 = vector.broadcast %318 : vector<8x1xf32> to vector<8x128xf32>
    %320 = arith.subf %312, %319 : vector<8x128xf32>
    %321 = vector.broadcast %0 : vector<1x128xf32> to vector<8x128xf32>
    %322 = arith.mulf %320, %321 : vector<8x128xf32>
    %323 = arith.mulf %322, %322 : vector<8x128xf32>
    %cst_197 = arith.constant dense<0.000000e+00> : vector<8xf32>
    %324 = vector.multi_reduction <add>, %323, %cst_197 [1] : vector<8x128xf32> to vector<8xf32>
    %325 = vector.shape_cast %324 : vector<8xf32> to vector<8x1xf32>
    %cst_198 = arith.constant 3.125000e-02 : f32
    %326 = vector.broadcast %cst_198 : f32 to vector<8x1xf32>
    %327 = arith.mulf %325, %326 : vector<8x1xf32>
    %cst_199 = arith.constant 9.99999974E-6 : f32
    %328 = vector.broadcast %cst_199 : f32 to vector<8x1xf32>
    %329 = arith.addf %327, %328 : vector<8x1xf32>
    %330 = math.rsqrt %329 : vector<8x1xf32>
    %331 = vector.broadcast %330 : vector<8x1xf32> to vector<8x128xf32>
    %332 = arith.mulf %322, %331 : vector<8x128xf32>
    %333 = vector.broadcast %313 : vector<1x128xf32> to vector<8x128xf32>
    %334 = arith.mulf %332, %333 : vector<8x128xf32>
    %335 = vector.broadcast %314 : vector<1x128xf32> to vector<8x128xf32>
    %336 = arith.addf %334, %335 : vector<8x128xf32>
    %c1_200 = arith.constant 1 : index
    %c0_201 = arith.constant 0 : index
    %c0_202 = arith.constant 0 : index
    %337 = vector.load %arg23[%c1_200, %c0_201, %c0_202] : memref<2x4x128xf32, #tpu.memory_space<vmem>>, vector<1x4x128xf32>
    %338 = vector.shape_cast %337 : vector<1x4x128xf32> to vector<4x128xf32>
    %339 = vector.extract_strided_slice %338 {offsets = [2, 0], sizes = [1, 128], strides = [1, 1]} : vector<4x128xf32> to vector<1x128xf32>
    %340 = vector.broadcast %339 : vector<1x128xf32> to vector<8x128xf32>
    %341 = arith.subf %336, %340 : vector<8x128xf32>
    %342 = vector.extract_strided_slice %338 {offsets = [3, 0], sizes = [1, 128], strides = [1, 1]} : vector<4x128xf32> to vector<1x128xf32>
    %cst_203 = arith.constant 9.99999974E-6 : f32
    %343 = vector.broadcast %cst_203 : f32 to vector<1x128xf32>
    %344 = arith.addf %342, %343 : vector<1x128xf32>
    %345 = math.rsqrt %344 : vector<1x128xf32>
    %346 = vector.broadcast %345 : vector<1x128xf32> to vector<8x128xf32>
    %347 = arith.mulf %341, %346 : vector<8x128xf32>
    %348 = vector.extract_strided_slice %338 {offsets = [0, 0], sizes = [1, 128], strides = [1, 1]} : vector<4x128xf32> to vector<1x128xf32>
    %349 = vector.broadcast %348 : vector<1x128xf32> to vector<8x128xf32>
    %350 = arith.mulf %347, %349 : vector<8x128xf32>
    %351 = vector.extract_strided_slice %338 {offsets = [1, 0], sizes = [1, 128], strides = [1, 1]} : vector<4x128xf32> to vector<1x128xf32>
    %352 = vector.broadcast %351 : vector<1x128xf32> to vector<8x128xf32>
    %353 = arith.addf %350, %352 : vector<8x128xf32>
    %c0_204 = arith.constant 0 : index
    %c0_205 = arith.constant 0 : index
    %354 = vector.load %arg24[%c0_204, %c0_205] : memref<8x128xf32, #tpu.memory_space<vmem>>, vector<8x128xf32>
    tpu.vector_store %arg24[%c0_204, %c0_205], %353 {strides = array<i32>} : memref<8x128xf32, #tpu.memory_space<vmem>>, vector<8x128xf32>,
    return
  }
}

</mosaic_0001>

<bundles_post_ra>
// kernel: tpu_custom_call.1
= control target key start
LH: loop header
LB: loop body
LE: loop exit
PB: predicated region body
PF: predicated region fallthrough
CT: control target
= control target key end

     0   :  { %s2571_s0 = inlined_call_operand.vmem [shape: f32[8,16], index: 0, kind: input, shape index: {}]   ;;  %s2572_s1 = inlined_call_operand.vmem [shape: f32[8,8], index: 1, kind: input, shape index: {}]   ;;  %s2573_s2 = inlined_call_operand.vmem [shape: f32[16,8], index: 2, kind: input, shape index: {}]   ;;  %s2574_s3 = inlined_call_operand.vmem [shape: f32[16,8], index: 3, kind: input, shape index: {}]   ;;  %s2575_s4 = inlined_call_operand.vmem [shape: f32[16,8], index: 4, kind: input, shape index: {}]   ;;  %s2576_s5 = inlined_call_operand.vmem [shape: f32[8,16], index: 5, kind: input, shape index: {}]   ;;  %s2577_s6 = inlined_call_operand.hbm [shape: f32[128,128], index: 6, kind: input, shape index: {}]   ;;  %s2578_s7 = inlined_call_operand.hbm [shape: f32[1,128], index: 7, kind: input, shape index: {}]   ;;  %s2579_s8 = inlined_call_operand.vmem [shape: f32[16,128], index: 8, kind: input, shape index: {}]   ;;  %s2580_s9 = inlined_call_operand.hbm [shape: f32[1,128], index: 9, kind: input, shape index: {}]   ;;  %s2581_s10 = inlined_call_operand.vmem [shape: f32[8,128], index: 10, kind: input, shape index: {}]   ;;  %s2582_s11 = inlined_call_operand.hbm [shape: f32[1,128], index: 11, kind: input, shape index: {}]   ;;  %s2583_s12 = inlined_call_operand.vmem [shape: f32[8,128], index: 12, kind: input, shape index: {}]   ;;  %s2584_s13 = inlined_call_operand.hbm [shape: f32[1,128], index: 13, kind: input, shape index: {}]   ;;  %s2585_s14 = inlined_call_operand.hbm [shape: f32[2,4,128,128], index: 14, kind: input, shape index: {}]   ;;  %s2586_s15 = inlined_call_operand.hbm [shape: f32[2,2,128,128], index: 15, kind: input, shape index: {}]   ;;  %s2587_s16 = inlined_call_operand.hbm [shape: f32[2,2,128], index: 16, kind: input, shape index: {}]   ;;  %s2588_s17 = inlined_call_operand.vmem [shape: f32[2,4,128], index: 17, kind: input, shape index: {}]   ;;  %s2589_s18 = inlined_call_operand.hbm [shape: f32[2,2,128,128], index: 18, kind: input, shape index: {}]   ;;  %s2590_s19 = inlined_call_operand.hbm [shape: f32[2,2,128], index: 19, kind: input, shape index: {}]   ;;  %s2591_s20 = inlined_call_operand.hbm [shape: f32[2,2,128,128], index: 20, kind: input, shape index: {}]   ;;  %s2592_s21 = inlined_call_operand.vmem [shape: f32[2,2,128], index: 21, kind: input, shape index: {}]   ;;  %s2593_s22 = inlined_call_operand.vmem [shape: f32[2,4,128], index: 22, kind: input, shape index: {}]   ;;  %s2594_s23 = inlined_call_operand.hbm [shape: f32[2,4,128], index: 23, kind: input, shape index: {}]   ;;  %s2595_s24 = inlined_call_operand.hbm [shape: f32[8,128], index: 24, kind: output, shape index: {}]  }
   0x1   :  { %2603 = sst [smem:[#allocation31_spill]] %s2571_s0 }
   0x2   :  { %2604 = sst [smem:[#allocation32_spill]] %s2572_s1 }
   0x3   :  { %2605 = sst [smem:[#allocation33_spill]] %s2573_s2 }
   0x4   :  { %2606 = sst [smem:[#allocation34_spill]] %s2574_s3 }
   0x5   :  { %2607 = sst [smem:[#allocation35_spill]] %s2575_s4 }
   0x6   :  { %2608 = sst [smem:[#allocation36_spill]] %s2576_s5 }
   0x7   :  { %2609 = sst [smem:[#allocation37_spill]] %s2577_s6 }
   0x8   :  { %2610 = sst [smem:[#allocation38_spill]] %s2578_s7 }
   0x9   :  { %2611 = sst [smem:[#allocation39_spill]] %s2579_s8 }
   0xa   :  { %29 = vsyncpa [#allocation3], 0 }
   0xb   :  { %30 = vsyncpa [#allocation6], 0 }
   0xc   :  { %31 = vsyncpa [#allocation9], 0 }
   0xd   :  { %32 = vsyncpa [#allocation12], 0 }
   0xe   :  { %33 = vsyncpa [#allocation15], 0 }
   0xf   :  { %34 = vsyncpa [#allocation18], 0 }
  0x10   :  { %35 = vsyncpa [#allocation21], 0  ;;  %s2612_s27 = sld [smem:[#allocation38_spill]] }
  0x16   :  { %s67_s28 = sshll.u32 %s2612_s27, 4  ;;  %s68_s28 = int_to_ptr.hbm [resolvable:$true] %s67_s28 }
  0x17   :  { %36 = vsyncpa [#allocation4], 0  ;;  %s2111_s6 = smov [#allocation5]   ;;  %s93_s7 = sshll.u32 %s2582_s11, 4  ;;  %s94_s7 = int_to_ptr.hbm [resolvable:$true] %s93_s7 }
  0x18   :  { %s69_s2 = sshll.u32 %s2111_s6, 4  ;;  %s2112_s30 = smov [#allocation8]   ;;  %s70_s2 = int_to_ptr.vmem [resolvable:$true] %s69_s2 }
  0x19   :  { %72 = dma.hbm_to_vmem [thread:$0]  %s68_s28, 16, %s70_s2, [#allocation6]  }
  0x1a   :  { %s95_s3 = sshll.u32 %s2112_s30, 4  ;;  %s116_s4 = sshll.u32 %s2585_s14, 4  ;;  %s96_s3 = int_to_ptr.vmem [resolvable:$true] %s95_s3  ;;  %s117_s4 = int_to_ptr.hbm [resolvable:$true] %s116_s4 }
  0x1b   :  { %98 = dma.hbm_to_vmem [thread:$0]  %s94_s7, 16, %s96_s3, [#allocation9]  }
  0x1c   :  { %s2113_s1 = smov [#allocation11]   ;;  %s142_s6 = sshll.u32 %s2587_s16, 4  ;;  %s143_s6 = int_to_ptr.hbm [resolvable:$true] %s142_s6 }
  0x1d   :  { %s118_s5 = sshll.u32 %s2113_s1, 4  ;;  %s2601_s29 = smov 128   ;;  %s119_s5 = int_to_ptr.vmem [resolvable:$true] %s118_s5 }
  0x1e   :  { %s2115_s11 = smov 8   ;;  %s2116_s28 = smov [#allocation14]  }
  0x1f   :  { %124 = dma.hbm_to_vmem [thread:$0]  %s117_s4, 16384, %s119_s5, [#allocation12], %s2601_s29, %s2601_s29, %s2115_s11  }
  0x20   :  { %s144_s2 = sshll.u32 %s2116_s28, 4  ;;  %s2117_s0 = smov 32   ;;  %s145_s2 = int_to_ptr.vmem [resolvable:$true] %s144_s2 }
  0x21   :  { %s2118_s14 = smov 2   ;;  %s170_s3 = sshll.u32 %s2590_s19, 4  ;;  %s171_s3 = int_to_ptr.hbm [resolvable:$true] %s170_s3 }
  0x22   :  { %150 = dma.hbm_to_vmem [thread:$0]  %s143_s6, 64, %s145_s2, [#allocation15], %s2117_s0, %s2117_s0, %s2118_s14  }
  0x23   :  { %s2119_s25 = smov [#allocation17]   ;;  %s2613_s26 = sld [smem:[#allocation37_spill]] }
  0x24   :  { %s172_s16 = sshll.u32 %s2119_s25, 4  ;;  %s2120_s4 = smov [#allocation2]   ;;  %s173_s16 = int_to_ptr.vmem [resolvable:$true] %s172_s16 }
  0x25   :  { %178 = dma.hbm_to_vmem [thread:$0]  %s171_s3, 64, %s173_s16, [#allocation18], %s2117_s0, %s2117_s0, %s2118_s14  }
  0x26   :  { %s55_s5 = sshll.u32 %s2120_s4, 4  ;;  %s80_s6 = sshll.u32 %s2580_s9, 4  ;;  %s56_s5 = int_to_ptr.vmem [resolvable:$true] %s55_s5  ;;  %s81_s6 = int_to_ptr.hbm [resolvable:$true] %s80_s6 }
  0x27   :  { %s2614_s19 = smov 128   ;;  %s106_s30 = sshll.u32 %s2584_s13, 4  ;;  %s107_s30 = int_to_ptr.hbm [resolvable:$true] %s106_s30 }
  0x28   :  { %s2121_s25 = smov [#allocation7]   ;;  %s2122_s0 = smov [#allocation10]  }
  0x29   :  { %s53_s27 = sshll.u32 %s2613_s26, 4  ;;  %s82_s8 = sshll.u32 %s2121_s25, 4  ;;  %s54_s27 = int_to_ptr.hbm [resolvable:$true] %s53_s27  ;;  %s83_s8 = int_to_ptr.vmem [resolvable:$true] %s82_s8 }
  0x2a   :  { %61 = dma.hbm_to_vmem [thread:$0]  %s54_s27, 2048, %s56_s5, [#allocation3], %s2614_s19, %s2614_s19, %s2115_s11  }
  0x2b   :  { %85 = dma.hbm_to_vmem [thread:$0]  %s81_s6, 16, %s83_s8, [#allocation6]  }
  0x2c   :  { %s108_s14 = sshll.u32 %s2122_s0, 4  ;;  %s129_s9 = sshll.u32 %s2586_s15, 4  ;;  %s109_s14 = int_to_ptr.vmem [resolvable:$true] %s108_s14  ;;  %s130_s9 = int_to_ptr.hbm [resolvable:$true] %s129_s9 }
  0x2d   :  { %111 = dma.hbm_to_vmem [thread:$0]  %s107_s30, 16, %s109_s14, [#allocation9]  }
  0x2e   :  { %s157_s26 = sshll.u32 %s2589_s18, 4  ;;  %s2123_s27 = smov [#allocation13]   ;;  %s158_s26 = int_to_ptr.hbm [resolvable:$true] %s157_s26 }
  0x2f   :  { %s131_s13 = sshll.u32 %s2123_s27, 4  ;;  %s2124_s4 = smov [#allocation16]   ;;  %s132_s13 = int_to_ptr.vmem [resolvable:$true] %s131_s13 }
  0x30   :  { %137 = dma.hbm_to_vmem [thread:$0]  %s130_s9, 8192, %s132_s13, [#allocation12], %s2614_s19, %s2614_s19, %s2115_s11  }
  0x31   :  { %s159_s5 = sshll.u32 %s2124_s4, 4  ;;  %s183_s15 = sshll.u32 %s2591_s20, 4  ;;  %s160_s5 = int_to_ptr.vmem [resolvable:$true] %s159_s5  ;;  %s184_s15 = int_to_ptr.hbm [resolvable:$true] %s183_s15 }
  0x32   :  { %165 = dma.hbm_to_vmem [thread:$0]  %s158_s26, 8192, %s160_s5, [#allocation15], %s2614_s19, %s2614_s19, %s2115_s11  }
  0x33   :  { %s200_s7 = sshll.u32 %s2594_s23, 4  ;;  %s2125_s30 = smov [#allocation19]   ;;  %s201_s7 = int_to_ptr.hbm [resolvable:$true] %s200_s7 }
  0x34   :  { %s185_s25 = sshll.u32 %s2125_s30, 4  ;;  %s2126_s8 = smov [#allocation20]   ;;  %s186_s25 = int_to_ptr.vmem [resolvable:$true] %s185_s25 }
  0x35   :  { %191 = dma.hbm_to_vmem [thread:$0]  %s184_s15, 8192, %s186_s25, [#allocation18], %s2614_s19, %s2614_s19, %s2115_s11  }
  0x36   :  { %s202_s20 = sshll.u32 %s2126_s8, 4  ;;  %s2127_s0 = smov 64   ;;  %s203_s20 = int_to_ptr.vmem [resolvable:$true] %s202_s20 }
  0x37   :  { %s2128_s14 = smov 4  }
  0x38   :  { %208 = dma.hbm_to_vmem [thread:$0]  %s201_s7, 128, %s203_s20, [#allocation21], %s2127_s0, %s2127_s0, %s2128_s14  }
  0x39   :  { %2095 = dma.done.wait [#allocation3], 2048  }
  0x3a   :  { %2096 = vsyncadd [#allocation3], 4294965248 }
  0x3b   :  { %2097 = dma.done.wait [#allocation6], 32  }
  0x3c   :  { %2098 = vsyncadd [#allocation6], 4294967264 }
  0x3d   :  { %2099 = dma.done.wait [#allocation9], 32  }
  0x3e   :  { %2100 = vsyncadd [#allocation9], 4294967264 }
  0x3f   :  { %2101 = dma.done.wait [#allocation12], 24576  }
  0x40   :  { %2102 = vsyncadd [#allocation12], 4294942720 }
  0x41   :  { %2103 = dma.done.wait [#allocation15], 8256  }
  0x42   :  { %2104 = vsyncadd [#allocation15], 4294959040 }
  0x43   :  { %2105 = dma.done.wait [#allocation18], 8256  }
  0x44   :  { %2106 = vsyncadd [#allocation18], 4294959040 }
  0x45   :  { %2107 = dma.done.wait [#allocation21], 128  }
  0x46   :  { %2108 = vsyncadd [#allocation21], 4294967168  ;;  %s2615_s19 = sld [smem:[#allocation39_spill]]  ;;  %vm312_vm0 = vcmask 64512   ;;  %vm286_vm1 = vcmask 130048   ;;  %v311_v3 = vld [vmem:[%s2581_s10] sm:$0xff] }
  0x47   :  { %s2616_s1 = sld [smem:[#allocation31_spill]]  ;;  %v344_v5 = vld [vmem:[%s2583_s12] sm:$0xff]  ;;  %331 = vmatpush.msra.mxu1 %v311_v3  ;;  %v392_v9 = vld [vmem:[#allocation11 + $0x70] sm:$0xff]  ;;  %v391_v12 = vld [vmem:[#allocation11 + $0x68] sm:$0xff] }
  0x48   :  { %s2617_s5 = sld [smem:[#allocation32_spill]]  ;;  %370 = vmatpush.msra.mxu2 %v344_v5  ;;  %v393_v6 = vld [vmem:[#allocation11 + $0x78] sm:$0xff]  ;;  %v429_v10 = vld [vmem:[#allocation11 + $0xf0] sm:$0xff]  ;;  %v428_v13 = vld [vmem:[#allocation11 + $0xe8] sm:$0xff] }
  0x49   :  { %v430_v7 = vld [vmem:[#allocation11 + $0xf8] sm:$0xff]  ;;  %394 = vmatpush.msra.mxu3 %v393_v6  ;;  %v466_v11 = vld [vmem:[#allocation11 + $0x170] sm:$0xff]  ;;  %v465_v14 = vld [vmem:[#allocation11 + $0x168] sm:$0xff]  ;;  %s2618_s15 = sld [smem:[#allocation33_spill]] }
  0x4a   :  { %v467_v8 = vld [vmem:[#allocation11 + $0x178] sm:$0xff]  ;;  %431 = vmatpush.msrb.mxu1 %v430_v7  ;;  %v390_v15 = vld [vmem:[#allocation11 + $0x60] sm:$0xff]  ;;  %v388_v22 = vld [vmem:[#allocation11 + $0x50] sm:$0xff]  ;;  %s2619_s25 = sld [smem:[#allocation34_spill]] }
  0x4b   :  { %468 = vmatpush.msrb.mxu2 %v467_v8  ;;  %395 = vmatpush.msra.mxu3 %v392_v9  ;;  %v427_v16 = vld [vmem:[#allocation11 + $0xe0] sm:$0xff]  ;;  %v389_v18 = vld [vmem:[#allocation11 + $0x58] sm:$0xff]  ;;  %v425_v23 = vld [vmem:[#allocation11 + $0xd0] sm:$0xff]  ;;  %s2620_s0 = sld [smem:[#allocation35_spill]] }
  0x4c   :  { %v281_v0 = vld [vmem:[%s2615_s19 + $0x8] sm:$0xff]  ;;  %v280_v1 = vld [vmem:[%s2615_s19] sm:$0xff]  ;;  %432 = vmatpush.msrb.mxu1 %v429_v10  ;;  %v462_v24 = vld [vmem:[#allocation11 + $0x150] sm:$0xff]  ;;  %s2621_s9 = sld [smem:[#allocation36_spill]]  ;;  %s1663_s19 = sshll.u32 %s2595_s24, 4  ;;  %s1664_s19 = int_to_ptr.hbm [resolvable:$true] %s1663_s19 }
  0x4d   :  { %v279_v2 = vld [vmem:[%s2616_s1] sm:$0xff]  ;;  %304 = vmatpush.msra.mxu0 %v281_v0  ;;  %469 = vmatpush.msrb.mxu2 %v466_v11  ;;  %v464_v17 = vld [vmem:[#allocation11 + $0x160] sm:$0xff]  ;;  %v387_v25 = vld [vmem:[#allocation11 + $0x48] sm:$0xff] }
  0x4e   :  { %v310_v4 = vld [vmem:[%s2617_s5] sm:$0xff]  ;;  %396 = vmatpush.msra.mxu3 %v391_v12  ;;  %433 = vmatpush.msrb.mxu1 %v428_v13  ;;  %v424_v26 = vld [vmem:[#allocation11 + $0xc8] sm:$0xff]  ;;  %v386_v28 = vld [vmem:[#allocation11 + $0x40] sm:$0xff] }
  0x4f   :  { %305 = vmatpush.msra.mxu0 %v280_v1  ;;  %1680 = vmatmul.msk.f32.vlgmr.msra.gmra.mxu1 %vm312_vm0, %v310_v4  ;;  %v426_v19 = vld [vmem:[#allocation11 + $0xd8] sm:$0xff]  ;;  %v461_v27 = vld [vmem:[#allocation11 + $0x148] sm:$0xff]  ;;  %v423_v29 = vld [vmem:[#allocation11 + $0xc0] sm:$0xff] }
  0x50   :  { %1679 = vmatmul.msk.f32.vlgmr.msra.gmra.mxu0 %vm286_vm1, %v279_v2  ;;  %470 = vmatpush.msrb.mxu2 %v465_v14  ;;  %v463_v20 = vld [vmem:[#allocation11 + $0x158] sm:$0xff]  ;;  %v460_v30 = vld [vmem:[#allocation11 + $0x140] sm:$0xff]  ;;  %v384_v35 = vld [vmem:[#allocation11 + $0x30] sm:$0xff] }
  0x51   :  { %397 = vmatpush.msra.mxu3 %v390_v15  ;;  %v342_v21 = vld [vmem:[%s2618_s15] sm:$0xff]  ;;  %434 = vmatpush.msrb.mxu1 %v427_v16  ;;  %v343_v32 = vld [vmem:[%s2618_s15 + $0x8] sm:$0xff]  ;;  %v421_v36 = vld [vmem:[#allocation11 + $0xb0] sm:$0xff] }
  0x52   :  { %471 = vmatpush.msrb.mxu2 %v464_v17  ;;  %v385_v31 = vld [vmem:[#allocation11 + $0x38] sm:$0xff]  ;;  %v458_v37 = vld [vmem:[#allocation11 + $0x130] sm:$0xff]  ;;  %v383_v38 = vld [vmem:[#allocation11 + $0x28] sm:$0xff] }
  0x53   :  { %398 = vmatpush.msra.mxu3 %v389_v18  ;;  %1681 = vmatmul.msk.f32.vlgmr.msra.gmra.mxu2 %vm312_vm0, %v342_v21  ;;  %v422_v33 = vld [vmem:[#allocation11 + $0xb8] sm:$0xff]  ;;  %v420_v39 = vld [vmem:[#allocation11 + $0xa8] sm:$0xff]  ;;  %v382_v41 = vld [vmem:[#allocation11 + $0x20] sm:$0xff] }
  0x54   :  { %435 = vmatpush.msrb.mxu1 %v426_v19  ;;  %472 = vmatpush.msrb.mxu2 %v463_v20  ;;  %v459_v34 = vld [vmem:[#allocation11 + $0x138] sm:$0xff]  ;;  %v457_v40 = vld [vmem:[#allocation11 + $0x128] sm:$0xff]  ;;  %v419_v42 = vld [vmem:[#allocation11 + $0xa0] sm:$0xff] }
  0x55   :  { %399 = vmatpush.msra.mxu3 %v388_v22  ;;  %v456_v43 = vld [vmem:[#allocation11 + $0x120] sm:$0xff]  ;;  %v381_v44 = vld [vmem:[#allocation11 + $0x18] sm:$0xff]  ;;  %v380_v47 = vld [vmem:[#allocation11 + $0x10] sm:$0xff] }
  0x56   :  { %436 = vmatpush.msrb.mxu1 %v425_v23  ;;  %473 = vmatpush.msrb.mxu2 %v462_v24  ;;  %v418_v45 = vld [vmem:[#allocation11 + $0x98] sm:$0xff]  ;;  %v417_v48 = vld [vmem:[#allocation11 + $0x90] sm:$0xff]  ;;  %v379_v50 = vld [vmem:[#allocation11 + $0x8] sm:$0xff] }
  0x57   :  { %400 = vmatpush.msra.mxu3 %v387_v25  ;;  %v455_v46 = vld [vmem:[#allocation11 + $0x118] sm:$0xff]  ;;  %v454_v49 = vld [vmem:[#allocation11 + $0x110] sm:$0xff]  ;;  %v416_v51 = vld [vmem:[#allocation11 + $0x88] sm:$0xff] }
  0x58   :  { %437 = vmatpush.msrb.mxu1 %v424_v26  ;;  %474 = vmatpush.msrb.mxu2 %v461_v27  ;;  %v453_v52 = vld [vmem:[#allocation11 + $0x108] sm:$0xff]  ;;  %v378_v53 = vld [vmem:[#allocation11] sm:$0xff]  ;;  %v1725_v56 = vld [vmem:[#allocation7] ss:$0 sm:$0xff] }
  0x59   :  { %401 = vmatpush.msra.mxu3 %v386_v28  ;;  %v415_v54 = vld [vmem:[#allocation11 + $0x80] sm:$0xff]  ;;  %v1726_v60 = vld [vmem:[#allocation8] ss:$0 sm:$0xff]  ;;  %v503_v0 = vld [vmem:[#allocation11 + $0x1f0] sm:$0xff] }
  0x5a   :  { %438 = vmatpush.msrb.mxu1 %v423_v29  ;;  %475 = vmatpush.msrb.mxu2 %v460_v30  ;;  %v452_v55 = vld [vmem:[#allocation11 + $0x100] sm:$0xff]  ;;  %v504_v63 = vld [vmem:[#allocation11 + $0x1f8] sm:$0xff]  ;;  %v502_v1 = vld [vmem:[#allocation11 + $0x1e8] sm:$0xff] }
  0x5b   :  { %402 = vmatpush.msra.mxu3 %v385_v31  ;;  %1682 = vmatmul.msk.f32.gmra.mxu2 %vm312_vm0, %v343_v32  ;;  %v501_v3 = vld [vmem:[#allocation11 + $0x1e0] sm:$0xff]  ;;  %v500_v4 = vld [vmem:[#allocation11 + $0x1d8] sm:$0xff]  ;;  %v499_v5 = vld [vmem:[#allocation11 + $0x1d0] sm:$0xff] }
  0x5c   :  { %439 = vmatpush.msrb.mxu1 %v422_v33  ;;  %476 = vmatpush.msrb.mxu2 %v459_v34  ;;  %v498_v6 = vld [vmem:[#allocation11 + $0x1c8] sm:$0xff]  ;;  %v497_v7 = vld [vmem:[#allocation11 + $0x1c0] sm:$0xff]  ;;  %v496_v9 = vld [vmem:[#allocation11 + $0x1b8] sm:$0xff] }
  0x5d   :  { %403 = vmatpush.msra.mxu3 %v384_v35  ;;  %505 = vmatpush.msrb.mxu0 %v504_v63  ;;  %v258_v10 = vld [vmem:[%s2619_s25] sm:$0xff]  ;;  %v495_v12 = vld [vmem:[#allocation11 + $0x1b0] sm:$0xff]  ;;  %v494_v13 = vld [vmem:[#allocation11 + $0x1a8] sm:$0xff] }
  0x5e   :  { %440 = vmatpush.msrb.mxu1 %v421_v36  ;;  %477 = vmatpush.msrb.mxu2 %v458_v37  ;;  %v278_v14 = vld [vmem:[#allocation2 + $0x78] sm:$0xff]  ;;  %v493_v15 = vld [vmem:[#allocation11 + $0x1a0] sm:$0xff]  ;;  %v277_v16 = vld [vmem:[#allocation2 + $0x70] sm:$0xff] }
  0x5f   :  { %404 = vmatpush.msra.mxu3 %v383_v38  ;;  %506 = vmatpush.msrb.mxu0 %v503_v0  ;;  %v260_v17 = vld [vmem:[%s2620_s0] sm:$0xff]  ;;  %v259_v21 = vld [vmem:[%s2619_s25 + $0x8] sm:$0xff]  ;;  %v491_v22 = vld [vmem:[#allocation11 + $0x190] sm:$0xff] }
  0x60   :  { %441 = vmatpush.msrb.mxu1 %v420_v39  ;;  %478 = vmatpush.msrb.mxu2 %v457_v40  ;;  %v492_v19 = vld [vmem:[#allocation11 + $0x198] sm:$0xff]  ;;  %v276_v23 = vld [vmem:[#allocation2 + $0x68] sm:$0xff]  ;;  %v490_v25 = vld [vmem:[#allocation11 + $0x188] sm:$0xff] }
  0x61   :  { %405 = vmatpush.msra.mxu3 %v382_v41  ;;  %507 = vmatpush.msrb.mxu0 %v502_v1  ;;  %v1727_v24 = vld [vmem:[#allocation10] ss:$0 sm:$0xff]  ;;  %v489_v27 = vld [vmem:[#allocation11 + $0x180] sm:$0xff]  ;;  %v274_v28 = vld [vmem:[#allocation2 + $0x58] sm:$0xff] }
  0x62   :  { %442 = vmatpush.msrb.mxu1 %v419_v42  ;;  %479 = vmatpush.msrb.mxu2 %v456_v43  ;;  %v275_v26 = vld [vmem:[#allocation2 + $0x60] sm:$0xff]  ;;  %v261_v30 = vld [vmem:[%s2620_s0 + $0x8] sm:$0xff]  ;;  %v273_v31 = vld [vmem:[#allocation2 + $0x50] sm:$0xff] }
  0x63   :  { %406 = vmatpush.msra.mxu3 %v381_v44  ;;  %508 = vmatpush.msrb.mxu0 %v501_v3  ;;  %v272_v32 = vld [vmem:[#allocation2 + $0x48] sm:$0xff]  ;;  %v271_v33 = vld [vmem:[#allocation2 + $0x40] sm:$0xff]  ;;  %v270_v34 = vld [vmem:[#allocation2 + $0x38] sm:$0xff] }
  0x64   :  { %443 = vmatpush.msrb.mxu1 %v418_v45  ;;  %480 = vmatpush.msrb.mxu2 %v455_v46  ;;  %v269_v36 = vld [vmem:[#allocation2 + $0x30] sm:$0xff]  ;;  %v268_v37 = vld [vmem:[#allocation2 + $0x28] sm:$0xff]  ;;  %v267_v38 = vld [vmem:[#allocation2 + $0x20] sm:$0xff] }
  0x65   :  { %407 = vmatpush.msra.mxu3 %v380_v47  ;;  %509 = vmatpush.msrb.mxu0 %v500_v4  ;;  %v266_v39 = vld [vmem:[#allocation2 + $0x18] sm:$0xff]  ;;  %v265_v40 = vld [vmem:[#allocation2 + $0x10] sm:$0xff]  ;;  %v264_v41 = vld [vmem:[#allocation2 + $0x8] sm:$0xff] }
  0x66   :  { %444 = vmatpush.msrb.mxu1 %v417_v48  ;;  %481 = vmatpush.msrb.mxu2 %v454_v49  ;;  %v263_v42 = vld [vmem:[#allocation2] sm:$0xff] }
  0x67   :  { %408 = vmatpush.msra.mxu3 %v379_v50  ;;  %510 = vmatpush.msrb.mxu0 %v499_v5  ;;  %v262_v5 = vld [vmem:[%s2621_s9] sm:$0xff] }
  0x68   :  { %445 = vmatpush.msrb.mxu1 %v416_v51  ;;  %482 = vmatpush.msrb.mxu2 %v453_v52 }
  0x69   :  { %409 = vmatpush.msra.mxu3 %v378_v53  ;;  %511 = vmatpush.msrb.mxu0 %v498_v6  ;;  %v770_v6 = vld [vmem:[#allocation13 + $0xf8] sm:$0xff] }
  0x6a   :  { %446 = vmatpush.msrb.mxu1 %v415_v54  ;;  %483 = vmatpush.msrb.mxu2 %v452_v55 }
  0x6b   :  { %512 = vmatpush.msrb.mxu0 %v497_v7 }
  0x6d   :  { %513 = vmatpush.msrb.mxu0 %v496_v9  ;;  %v768_v9 = vld [vmem:[#allocation13 + $0xe8] sm:$0xff] }
  0x6f   :  { %514 = vmatpush.msrb.mxu0 %v495_v12  ;;  %v765_v12 = vld [vmem:[#allocation13 + $0xd0] sm:$0xff] }
  0x71   :  { %515 = vmatpush.msrb.mxu0 %v494_v13  ;;  %v732_v13 = vld [vmem:[#allocation13 + $0x78] sm:$0xff] }
  0x73   :  { %516 = vmatpush.msrb.mxu0 %v493_v15  ;;  %v764_v15 = vld [vmem:[#allocation13 + $0xc8] sm:$0xff] }
  0x75   :  { %517 = vmatpush.msrb.mxu0 %v492_v19  ;;  %v762_v19 = vld [vmem:[#allocation13 + $0xb8] sm:$0xff] }
  0x77   :  { %518 = vmatpush.msrb.mxu0 %v491_v22  ;;  %v727_v22 = vld [vmem:[#allocation13 + $0x50] sm:$0xff] }
  0x79   :  { %519 = vmatpush.msrb.mxu0 %v490_v25  ;;  %v759_v25 = vld [vmem:[#allocation13 + $0xa0] sm:$0xff] }
  0x7b   :  { %520 = vmatpush.msrb.mxu0 %v489_v27  ;;  %v758_v27 = vld [vmem:[#allocation13 + $0x98] sm:$0xff] }
  0x7d   :  { %611 = vmatpush.msra.mxu0 %v278_v14 }
  0x7f   :  { %612 = vmatpush.msra.mxu0 %v277_v16 }
  0x81   :  { %613 = vmatpush.msra.mxu0 %v276_v23 }
  0x83   :  { %614 = vmatpush.msra.mxu0 %v275_v26 }
  0x85   :  { %615 = vmatpush.msra.mxu0 %v274_v28 }
  0x87   :  { %616 = vmatpush.msra.mxu0 %v273_v31 }
  0x89   :  { %617 = vmatpush.msra.mxu0 %v272_v32 }
  0x8b   :  { %618 = vmatpush.msra.mxu0 %v271_v33 }
  0x8d   :  { %619 = vmatpush.msra.mxu0 %v270_v34 }
  0x8f   :  { %620 = vmatpush.msra.mxu0 %v269_v36 }
  0x91   :  { %621 = vmatpush.msra.mxu0 %v268_v37 }
  0x93   :  { %622 = vmatpush.msra.mxu0 %v267_v38 }
  0x95   :  { %623 = vmatpush.msra.mxu0 %v266_v39 }
  0x97   :  { %624 = vmatpush.msra.mxu0 %v265_v40 }
  0x99   :  { %625 = vmatpush.msra.mxu0 %v264_v41 }
  0x9b   :  { %626 = vmatpush.msra.mxu0 %v263_v42 }
  0xcc   :  { %v333_v58 = vpop.f32.mrf.mxu1 }
  0xcd   :  { %v307_v57 = vpop.f32.mrf.mxu0 }
  0xce   :  { %v308_v59 = vadd.f32 %v1725_v56, %v307_v57 }
  0xd0   :  { %v336_v61 = vadd.f32 %v333_v58, %v308_v59 }
  0xd2   :  { %v2334_v62 = vadd.f32 %v1726_v60, %v336_v61 }
  0xd4   :  { %410 = vmatmul.f32.vlgmr.msra.gmra.mxu3 %v2334_v62  ;;  %447 = vmatmul.f32.vlgmr.msrb.gmra.mxu1 %v2334_v62 }
  0xd5   :  { %484 = vmatmul.f32.vlgmr.msrb.gmra.mxu2 %v2334_v62 }
  0xd6   :  { %v372_v2 = vpop.f32.mrf.mxu2 }
  0xd7   :  { %v2352_v29 = vadd.f32 %v1727_v24, %v372_v2 }
  0xd9   :  { %521 = vmatmul.f32.vlgmr.msrb.gmra.mxu0 %v2352_v29 }
  0xde   :  { %v375_v8 = vpop.f32.mrf.mxu2 }
  0xdf   :  { %v2360_v35 = vadd.f32 %v1727_v24, %v375_v8  ;;  %v769_v8 = vld [vmem:[#allocation13 + $0xf0] sm:$0xff]  ;;  %v726_v24 = vld [vmem:[#allocation13 + $0x48] sm:$0xff] }
  0xe1   :  { %524 = vmatmul.f32.gmra.mxu0 %v2360_v35 }
 0x151   :  { %v448_v11 = vpop.f32.mrf.mxu1 }
 0x152   :  { %549 = vmatpush.msrb.mxu3 %v448_v11  ;;  %v766_v11 = vld [vmem:[#allocation13 + $0xd8] sm:$0xff] }
 0x153   :  { %1683 = vmatmul.msk.f32.vlgmr.msrb.gmra.mxu3 %vm312_vm0, %v258_v10 }
 0x154   :  { %638 = vmatpush.msra.mxu3 %v278_v14  ;;  %v731_v14 = vld [vmem:[#allocation13 + $0x70] sm:$0xff] }
 0x156   :  { %639 = vmatpush.msra.mxu3 %v277_v16  ;;  %v522_v49 = vpop.f32.mrf.mxu0  ;;  %v730_v16 = vld [vmem:[#allocation13 + $0x68] sm:$0xff] }
 0x157   :  { %v411_v18 = vpop.f32.mrf.mxu3 }
 0x158   :  { %v485_v20 = vpop.f32.mrf.mxu2  ;;  %578 = vmatpush.msra.mxu1 %v411_v18  ;;  %640 = vmatpush.msra.mxu3 %v276_v23  ;;  %v729_v18 = vld [vmem:[#allocation13 + $0x60] sm:$0xff]  ;;  %v760_v23 = vld [vmem:[#allocation13 + $0xa8] sm:$0xff] }
 0x159   :  { %601 = vmatpush.msra.mxu2 %v485_v20  ;;  %1685 = vmatmul.msk.f32.vlgmr.msra.gmra.mxu1 %vm312_vm0, %v260_v17  ;;  %v763_v17 = vld [vmem:[#allocation13 + $0xc0] sm:$0xff]  ;;  %v728_v20 = vld [vmem:[#allocation13 + $0x58] sm:$0xff] }
 0x15a   :  { %1687 = vmatmul.msk.f32.vlgmr.msra.gmra.mxu2 %vm312_vm0, %v258_v10  ;;  %641 = vmatpush.msra.mxu3 %v275_v26  ;;  %v767_v10 = vld [vmem:[#allocation13 + $0xe0] sm:$0xff] }
 0x15b   :  { %1684 = vmatmul.msk.f32.gmra.mxu3 %vm312_vm0, %v259_v21  ;;  %v725_v26 = vld [vmem:[#allocation13 + $0x40] sm:$0xff] }
 0x15c   :  { %642 = vmatpush.msra.mxu3 %v274_v28  ;;  %v724_v28 = vld [vmem:[#allocation13 + $0x38] sm:$0xff] }
 0x15e   :  { %643 = vmatpush.msra.mxu3 %v273_v31  ;;  %v525_v50 = vpop.f32.mrf.mxu0  ;;  %v723_v31 = vld [vmem:[#allocation13 + $0x30] sm:$0xff] }
 0x160   :  { %644 = vmatpush.msra.mxu3 %v272_v32  ;;  %v756_v32 = vld [vmem:[#allocation13 + $0x88] sm:$0xff] }
 0x161   :  { %1686 = vmatmul.msk.f32.gmra.mxu1 %vm312_vm0, %v261_v30  ;;  %v757_v30 = vld [vmem:[#allocation13 + $0x90] sm:$0xff] }
 0x162   :  { %1688 = vmatmul.msk.f32.gmra.mxu2 %vm312_vm0, %v259_v21  ;;  %645 = vmatpush.msra.mxu3 %v271_v33  ;;  %v761_v21 = vld [vmem:[#allocation13 + $0xb0] sm:$0xff]  ;;  %v755_v33 = vld [vmem:[#allocation13 + $0x80] sm:$0xff] }
 0x164   :  { %646 = vmatpush.msra.mxu3 %v270_v34  ;;  %v722_v34 = vld [vmem:[#allocation13 + $0x28] sm:$0xff] }
 0x166   :  { %647 = vmatpush.msra.mxu3 %v269_v36  ;;  %v721_v36 = vld [vmem:[#allocation13 + $0x20] sm:$0xff] }
 0x168   :  { %648 = vmatpush.msra.mxu3 %v268_v37  ;;  %v720_v37 = vld [vmem:[#allocation13 + $0x18] sm:$0xff] }
 0x16a   :  { %649 = vmatpush.msra.mxu3 %v267_v38  ;;  %v719_v38 = vld [vmem:[#allocation13 + $0x10] sm:$0xff] }
 0x16c   :  { %650 = vmatpush.msra.mxu3 %v266_v39  ;;  %v718_v39 = vld [vmem:[#allocation13 + $0x8] sm:$0xff] }
 0x16e   :  { %651 = vmatpush.msra.mxu3 %v265_v40  ;;  %v717_v40 = vld [vmem:[#allocation13] sm:$0xff] }
 0x170   :  { %652 = vmatpush.msra.mxu3 %v264_v41 }
 0x172   :  { %653 = vmatpush.msra.mxu3 %v263_v42 }
 0x1d6   :  { %v551_v43 = vpop.f32.mrf.mxu3  ;;  %v580_v44 = vpop.f32.mrf.mxu1 }
 0x1d7   :  { %v609_v45 = vmul.f32 %v580_v44, %v551_v43 }
 0x1d9   :  { %627 = vmatmul.f32.vlgmr.msra.gmra.mxu0 %v609_v45 }
 0x1dd   :  { %v603_v59 = vpop.f32.mrf.mxu2 }
 0x1de   :  { %v554_v46 = vpop.f32.mrf.mxu3  ;;  %v583_v47 = vpop.f32.mrf.mxu1 }
 0x1df   :  { %v610_v48 = vmul.f32 %v583_v47, %v554_v46  ;;  %v716_v46 = vld [vmem:[#allocation14] sm:$0x3] }
 0x1e0   :  { %v771_v47 = vperm.slane %v716_v46, 1 }
 0x1e1   :  { %630 = vmatmul.f32.gmra.mxu0 %v610_v48 }
 0x1e5   :  { %v606_v1 = vpop.f32.mrf.mxu2 }
 0x256   :  { %v628_v51 = vpop.f32.mrf.mxu0 }
 0x257   :  { %v634_v52 = vmul.f32 0.35355338, %v628_v51 }
 0x259   :  { %v2363_v53 = vmul.f32 %v634_v52, %v522_v49 }
 0x25b   :  { %654 = vmatmul.f32.vlgmr.msra.gmra.mxu3 %v2363_v53 }
 0x25e   :  { %v631_v54 = vpop.f32.mrf.mxu0 }
 0x25f   :  { %v635_v55 = vmul.f32 0.35355338, %v631_v54  ;;  %v733_v54 = vperm.slane %v716_v46, 0 }
 0x261   :  { %v2366_v56 = vmul.f32 %v635_v55, %v525_v50 }
 0x263   :  { %657 = vmatmul.f32.gmra.mxu3 %v2366_v56 }
 0x2de   :  { %v655_v57 = vpop.f32.mrf.mxu3 }
 0x2df   :  { %v1689_v58 = vclamps-f32 %v655_v57, 5.0 }
 0x2e1   :  { %v665_v60 = vmul.f32 1.442695, %v1689_v58 }
 0x2e3   :  { %1729 = vpow2.f32 %v665_v60  ;;  %v2379_v60 = vld [vmem:[#allocation5] ss:$0 sm:$0xff] }
 0x2e6   :  { %v658_v61 = vpop.f32.mrf.mxu3 }
 0x2e7   :  { %v1690_v63 = vclamps-f32 %v658_v61, 5.0 }
 0x2e9   :  { %v667_v0 = vmul.f32 1.442695, %v1690_v63  ;;  %v1730_v2 = vpop.eup %1729 }
 0x2ea   :  { %v669_v7 = vmul.f32 %v1730_v2, %v603_v59 }
 0x2eb   :  { %1731 = vpow2.f32 %v667_v0 }
 0x2f1   :  { %v1732_v3 = vpop.eup %1731 }
 0x2f2   :  { %v670_v4 = vmul.f32 %v1732_v3, %v606_v1  ;;  %708 = vmatpush.msrb.mxu2 %v1732_v3  ;;  %v995_v3 = vld [vmem:[#allocation16 + $0xf8] sm:$0xff] }
 0x2f4   :  { %688 = vmatpush.msrb.mxu1 %v670_v4  ;;  %709 = vmatpush.msrb.mxu2 %v1730_v2  ;;  %v994_v4 = vld [vmem:[#allocation16 + $0xf0] sm:$0xff] }
 0x2f5   :  { %1692 = vmatmul.msk.f32.vlgmr.msrb.gmra.mxu2 %vm286_vm1, %v262_v5 }
 0x2f6   :  { %772 = vmatpush.msra.mxu2 %v770_v6  ;;  %689 = vmatpush.msrb.mxu1 %v669_v7  ;;  %v992_v6 = vld [vmem:[#allocation16 + $0xe0] sm:$0xff]  ;;  %v991_v7 = vld [vmem:[#allocation16 + $0xd8] sm:$0xff] }
 0x2f7   :  { %1691 = vmatmul.msk.f32.vlgmr.msrb.gmra.mxu1 %vm286_vm1, %v262_v5  ;;  %v993_v5 = vld [vmem:[#allocation16 + $0xe8] sm:$0xff] }
 0x2f8   :  { %773 = vmatpush.msra.mxu2 %v769_v8  ;;  %734 = vmatpush.msra.mxu1 %v732_v13  ;;  %v990_v8 = vld [vmem:[#allocation16 + $0xd0] sm:$0xff] }
 0x2fa   :  { %774 = vmatpush.msra.mxu2 %v768_v9  ;;  %735 = vmatpush.msra.mxu1 %v731_v14  ;;  %v989_v9 = vld [vmem:[#allocation16 + $0xc8] sm:$0xff]  ;;  %v986_v14 = vld [vmem:[#allocation16 + $0xb0] sm:$0xff] }
 0x2fc   :  { %775 = vmatpush.msra.mxu2 %v767_v10  ;;  %736 = vmatpush.msra.mxu1 %v730_v16  ;;  %v988_v10 = vld [vmem:[#allocation16 + $0xc0] sm:$0xff]  ;;  %v985_v16 = vld [vmem:[#allocation16 + $0xa8] sm:$0xff] }
 0x2fe   :  { %776 = vmatpush.msra.mxu2 %v766_v11  ;;  %737 = vmatpush.msra.mxu1 %v729_v18  ;;  %v984_v18 = vld [vmem:[#allocation16 + $0xa0] sm:$0xff] }
 0x300   :  { %777 = vmatpush.msra.mxu2 %v765_v12  ;;  %738 = vmatpush.msra.mxu1 %v728_v20  ;;  %v987_v12 = vld [vmem:[#allocation16 + $0xb8] sm:$0xff] }
 0x301   :  { %v983_v20 = vld [vmem:[#allocation16 + $0x98] sm:$0xff] }
 0x302   :  { %778 = vmatpush.msra.mxu2 %v764_v15  ;;  %739 = vmatpush.msra.mxu1 %v727_v22  ;;  %v981_v22 = vld [vmem:[#allocation16 + $0x88] sm:$0xff] }
 0x304   :  { %779 = vmatpush.msra.mxu2 %v763_v17  ;;  %740 = vmatpush.msra.mxu1 %v726_v24 }
 0x306   :  { %780 = vmatpush.msra.mxu2 %v762_v19  ;;  %741 = vmatpush.msra.mxu1 %v725_v26 }
 0x308   :  { %781 = vmatpush.msra.mxu2 %v761_v21  ;;  %742 = vmatpush.msra.mxu1 %v724_v28  ;;  %v982_v21 = vld [vmem:[#allocation16 + $0x90] sm:$0xff] }
 0x309   :  { %v892_v28 = vld [vmem:[#allocation16 + $0x70] sm:$0xff] }
 0x30a   :  { %782 = vmatpush.msra.mxu2 %v760_v23  ;;  %743 = vmatpush.msra.mxu1 %v723_v31  ;;  %v980_v23 = vld [vmem:[#allocation16 + $0x80] sm:$0xff] }
 0x30c   :  { %783 = vmatpush.msra.mxu2 %v759_v25  ;;  %744 = vmatpush.msra.mxu1 %v722_v34 }
 0x30e   :  { %784 = vmatpush.msra.mxu2 %v758_v27  ;;  %745 = vmatpush.msra.mxu1 %v721_v36  ;;  %v893_v27 = vld [vmem:[#allocation16 + $0x78] sm:$0xff] }
 0x30f   :  { %895 = vmatpush.msrb.mxu0 %v893_v27  ;;  %v1025_v27 = vld [vmem:[#allocation19 + $0x90] sm:$0xff] }
 0x310   :  { %785 = vmatpush.msra.mxu2 %v757_v30  ;;  %746 = vmatpush.msra.mxu1 %v720_v37 }
 0x311   :  { %896 = vmatpush.msrb.mxu0 %v892_v28 }
 0x312   :  { %786 = vmatpush.msra.mxu2 %v756_v32  ;;  %747 = vmatpush.msra.mxu1 %v719_v38 }
 0x314   :  { %787 = vmatpush.msra.mxu2 %v755_v33  ;;  %748 = vmatpush.msra.mxu1 %v718_v39  ;;  %v2399_v39 = vld [vmem:[%s2588_s17] sm:$0xf] }
 0x315   :  { %788 = vmatmul.f32.vlgmr.msra.gmra.mxu2 %v2363_v53 }
 0x316   :  { %749 = vmatpush.msra.mxu1 %v717_v40 }
 0x318   :  { %997 = vmatpush.msrb.mxu1 %v995_v3  ;;  %v1038_v3 = vld [vmem:[#allocation19 + $0xf8] sm:$0xff] }
 0x319   :  { %1040 = vmatpush.msrb.mxu2 %v1038_v3 }
 0x31a   :  { %998 = vmatpush.msrb.mxu1 %v994_v4  ;;  %v880_v4 = vld [vmem:[#allocation16 + $0x10] sm:$0xff] }
 0x31c   :  { %999 = vmatpush.msrb.mxu1 %v993_v5  ;;  %v1037_v5 = vld [vmem:[#allocation19 + $0xf0] sm:$0xff] }
 0x31d   :  { %791 = vmatmul.f32.gmra.mxu2 %v2366_v56 }
 0x31e   :  { %1000 = vmatpush.msrb.mxu1 %v992_v6  ;;  %v879_v6 = vld [vmem:[#allocation16 + $0x8] sm:$0xff]  ;;  %1041 = vmatpush.msrb.mxu2 %v1037_v5 }
 0x320   :  { %1001 = vmatpush.msrb.mxu1 %v991_v7  ;;  %v1036_v7 = vld [vmem:[#allocation19 + $0xe8] sm:$0xff] }
 0x321   :  { %1042 = vmatpush.msrb.mxu2 %v1036_v7 }
 0x322   :  { %1002 = vmatpush.msrb.mxu1 %v990_v8  ;;  %v878_v8 = vld [vmem:[#allocation16] sm:$0xff] }
 0x324   :  { %1003 = vmatpush.msrb.mxu1 %v989_v9  ;;  %v1035_v9 = vld [vmem:[#allocation19 + $0xe0] sm:$0xff] }
 0x325   :  { %1043 = vmatpush.msrb.mxu2 %v1035_v9 }
 0x326   :  { %1004 = vmatpush.msrb.mxu1 %v988_v10  ;;  %v1034_v10 = vld [vmem:[#allocation19 + $0xd8] sm:$0xff] }
 0x327   :  { %1044 = vmatpush.msrb.mxu2 %v1034_v10 }
 0x328   :  { %1005 = vmatpush.msrb.mxu1 %v987_v12 }
 0x32a   :  { %1006 = vmatpush.msrb.mxu1 %v986_v14 }
 0x32c   :  { %1007 = vmatpush.msrb.mxu1 %v985_v16 }
 0x32e   :  { %1008 = vmatpush.msrb.mxu1 %v984_v18  ;;  %v1030_v18 = vld [vmem:[#allocation19 + $0xb8] sm:$0xff] }
 0x330   :  { %1009 = vmatpush.msrb.mxu1 %v983_v20  ;;  %v1028_v20 = vld [vmem:[#allocation19 + $0xa8] sm:$0xff] }
 0x332   :  { %1010 = vmatpush.msrb.mxu1 %v982_v21  ;;  %v1027_v21 = vld [vmem:[#allocation19 + $0xa0] sm:$0xff] }
 0x334   :  { %1011 = vmatpush.msrb.mxu1 %v981_v22 }
 0x336   :  { %1012 = vmatpush.msrb.mxu1 %v980_v23 }
 0x374   :  { %v691_v43 = vpop.f32.mrf.mxu1 }
 0x378   :  { %v711_v41 = vpop.f32.mrf.mxu2 }
 0x379   :  { %v712_v42 = vadd.f32 1e-06, %v711_v41 }
 0x37b   :  { %1733 = vrcp.f32 %v712_v42 }
 0x381   :  { %v1734_v44 = vpop.eup %1733 }
 0x382   :  { %v715_v45 = vmul.f32 %v1734_v44, %v691_v43  ;;  %v869_v43 = vperm.slane %v2399_v39, 2 }
 0x384   :  { %750 = vmatmul.f32.vlgmr.msra.gmra.mxu1 %v715_v45 }
 0x398   :  { %v789_v48 = vpop.f32.mrf.mxu2 }
 0x399   :  { %v790_v49 = vadd.f32 %v789_v48, %v771_v47 }
 0x39b   :  { %v825_v50 = vadd.f32 %v790_v49, %v2352_v29 }
 0x39d   :  { %827 = vadd.xlane.f32.xlu1 %v825_v50 }
 0x3a0   :  { %v792_v51 = vpop.f32.mrf.mxu2 }
 0x3a1   :  { %v793_v52 = vadd.f32 %v792_v51, %v771_v47  ;;  %v872_v47 = vperm.slane %v2399_v39, 3 }
 0x3a3   :  { %v826_v53 = vadd.f32 %v793_v52, %v2360_v35 }
 0x3a5   :  { %829 = vadd.xlane.f32.xlu1 %v826_v53 }
 0x401   :  { %v751_v55 = vpop.f32.mrf.mxu1 }
 0x402   :  { %v752_v56 = vadd.f32 %v751_v55, %v733_v54 }
 0x404   :  { %v796_v57 = vadd.f32 %v752_v56, %v2334_v62 }
 0x406   :  { %797 = vadd.xlane.f32.xlu0 %v796_v57 }
 0x410   :  { %v828_v58 = vpop.xlane.xlu1 %827 }
 0x411   :  { %v831_v59 = vmul.f32 0.03125, %v828_v58  ;;  %v890_v58 = vld [vmem:[#allocation16 + $0x60] sm:$0xff] }
 0x413   :  { %v833_v61 = vsub.f32 %v825_v50, %v831_v59  ;;  %v889_v59 = vld [vmem:[#allocation16 + $0x58] sm:$0xff] }
 0x415   :  { %v2382_v63 = vmul.f32 %v2379_v60, %v833_v61  ;;  %v888_v61 = vld [vmem:[#allocation16 + $0x50] sm:$0xff] }
 0x417   :  { %v837_v29 = vmul.f32 %v2382_v63, %v2382_v63 }
 0x418   :  { %v830_v0 = vpop.xlane.xlu1 %829 }
 0x419   :  { %v832_v35 = vmul.f32 0.03125, %v830_v0  ;;  %839 = vadd.xlane.f32.xlu2 %v837_v29  ;;  %v886_v29 = vld [vmem:[#allocation16 + $0x40] sm:$0xff]  ;;  %v885_v0 = vld [vmem:[#allocation16 + $0x38] sm:$0xff] }
 0x41b   :  { %v834_v1 = vsub.f32 %v826_v53, %v832_v35  ;;  %v884_v35 = vld [vmem:[#allocation16 + $0x30] sm:$0xff] }
 0x41d   :  { %v2387_v2 = vmul.f32 %v2379_v60, %v834_v1  ;;  %v883_v1 = vld [vmem:[#allocation16 + $0x28] sm:$0xff] }
 0x41f   :  { %v838_v62 = vmul.f32 %v2387_v2, %v2387_v2 }
 0x421   :  { %841 = vadd.xlane.f32.xlu2 %v838_v62  ;;  %v881_v62 = vld [vmem:[#allocation16 + $0x18] sm:$0xff] }
 0x479   :  { %v798_v11 = vpop.xlane.xlu0 %797 }
 0x47a   :  { %v799_v13 = vmul.f32 0.03125, %v798_v11  ;;  %v1033_v11 = vld [vmem:[#allocation19 + $0xd0] sm:$0xff] }
 0x47b   :  { %1045 = vmatpush.msrb.mxu2 %v1033_v11 }
 0x47c   :  { %v800_v15 = vsub.f32 %v796_v57, %v799_v13  ;;  %v891_v57 = vld [vmem:[#allocation16 + $0x68] sm:$0xff] }
 0x47d   :  { %897 = vmatpush.msrb.mxu0 %v891_v57  ;;  %v1032_v13 = vld [vmem:[#allocation19 + $0xc8] sm:$0xff] }
 0x47e   :  { %v2392_v17 = vmul.f32 %v2379_v60, %v800_v15  ;;  %v1031_v15 = vld [vmem:[#allocation19 + $0xc0] sm:$0xff]  ;;  %1046 = vmatpush.msrb.mxu2 %v1032_v13 }
 0x47f   :  { %898 = vmatpush.msrb.mxu0 %v890_v58  ;;  %v919_v58 = vld [vmem:[#allocation19 + $0x18] sm:$0xff] }
 0x480   :  { %v805_v19 = vmul.f32 %v2392_v17, %v2392_v17  ;;  %1047 = vmatpush.msrb.mxu2 %v1031_v15 }
 0x481   :  { %899 = vmatpush.msrb.mxu0 %v889_v59 }
 0x482   :  { %806 = vadd.xlane.f32.xlu0 %v805_v19  ;;  %v1029_v19 = vld [vmem:[#allocation19 + $0xb0] sm:$0xff]  ;;  %1048 = vmatpush.msrb.mxu2 %v1030_v18 }
 0x483   :  { %900 = vmatpush.msrb.mxu0 %v888_v61 }
 0x484   :  { %1049 = vmatpush.msrb.mxu2 %v1029_v19 }
 0x486   :  { %1050 = vmatpush.msrb.mxu2 %v1028_v20 }
 0x488   :  { %1051 = vmatpush.msrb.mxu2 %v1027_v21 }
 0x48c   :  { %v840_v24 = vpop.xlane.xlu2 %839 }
 0x48d   :  { %v843_v25 = vmul.f32 0.03125, %v840_v24  ;;  %v1026_v24 = vld [vmem:[#allocation19 + $0x98] sm:$0xff] }
 0x48e   :  { %1052 = vmatpush.msrb.mxu2 %v1026_v24 }
 0x48f   :  { %v845_v26 = vadd.f32 1e-05, %v843_v25 }
 0x490   :  { %1053 = vmatpush.msrb.mxu2 %v1025_v27 }
 0x491   :  { %1735 = vrsqrt.f32 %v845_v26  ;;  %vm853_vm3 = vweird.f32 %v845_v26 }
 0x494   :  { %v842_v30 = vpop.xlane.xlu2 %841 }
 0x495   :  { %v844_v31 = vmul.f32 0.03125, %v842_v30  ;;  %v1024_v30 = vld [vmem:[#allocation19 + $0x88] sm:$0xff] }
 0x496   :  { %1054 = vmatpush.msrb.mxu2 %v1024_v30 }
 0x497   :  { %v1736_v32 = vpop.eup %1735  ;;  %v846_v33 = vadd.f32 1e-05, %v844_v31 }
 0x498   :  { %v848_v34 = vmul.f32 %v1736_v32, %v845_v26  ;;  %vm854_vm2 = vweird.f32 %v1736_v32 }
 0x499   :  { %1737 = vrsqrt.f32 %v846_v33  ;;  %vm855_vm4 = vmor %vm853_vm3, %vm854_vm2  ;;  %vm863_vm6 = vweird.f32 %v846_v33 }
 0x49a   :  { %v849_v36 = vmul.f32 %v1736_v32, %v848_v34 }
 0x49c   :  { %v850_v37 = vmul.f32 0.5, %v849_v36 }
 0x49e   :  { %v851_v38 = vsub.f32 1.5, %v850_v37  ;;  %v823_v37 = vperm.slane %v2399_v39, 1 }
 0x49f   :  { %v1738_v40 = vpop.eup %1737 }
 0x4a0   :  { %v852_v41 = vmul.f32 %v1736_v32, %v851_v38  ;;  %v858_v42 = vmul.f32 %v1738_v40, %v846_v33  ;;  %vm864_vm5 = vweird.f32 %v1738_v40  ;;  %v821_v33 = vperm.slane %v2399_v39, 0  ;;  %v923_v39 = vld [vmem:[#allocation19 + $0x38] sm:$0xff] }
 0x4a1   :  { %vm865_vm7 = vmor %vm863_vm6, %vm864_vm5 }
 0x4a2   :  { %v856_v44 = vsel %vm855_vm4, %v1736_v32, %v852_v41  ;;  %v859_v45 = vmul.f32 %v1738_v40, %v858_v42  ;;  %v1023_v32 = vld [vmem:[#allocation19 + $0x80] sm:$0xff]  ;;  %v931_v41 = vld [vmem:[#allocation19 + $0x78] sm:$0xff]  ;;  %v930_v42 = vld [vmem:[#allocation19 + $0x70] sm:$0xff] }
 0x4a3   :  { %v867_v46 = vmul.f32 %v856_v44, %v2382_v63  ;;  %v887_v63 = vld [vmem:[#allocation16 + $0x48] sm:$0xff]  ;;  %1055 = vmatpush.msrb.mxu2 %v1023_v32  ;;  %933 = vmatpush.msrb.mxu3 %v931_v41  ;;  %v1186_v32 = vld [vmem:[#allocation11 + $0x2f8] sm:$0xff] }
 0x4a4   :  { %v860_v48 = vmul.f32 0.5, %v859_v45  ;;  %901 = vmatpush.msrb.mxu0 %v887_v63  ;;  %v928_v44 = vld [vmem:[#allocation19 + $0x60] sm:$0xff]  ;;  %v927_v45 = vld [vmem:[#allocation19 + $0x58] sm:$0xff] }
 0x4a5   :  { %v870_v49 = vmul.f32 %v869_v43, %v867_v46  ;;  %934 = vmatpush.msrb.mxu3 %v930_v42  ;;  %v926_v46 = vld [vmem:[#allocation19 + $0x50] sm:$0xff]  ;;  %v1184_v41 = vld [vmem:[#allocation11 + $0x2e8] sm:$0xff] }
 0x4a6   :  { %v861_v50 = vsub.f32 1.5, %v860_v48  ;;  %902 = vmatpush.msrb.mxu0 %v886_v29  ;;  %v924_v48 = vld [vmem:[#allocation19 + $0x40] sm:$0xff]  ;;  %v918_v29 = vld [vmem:[#allocation19 + $0x10] sm:$0xff] }
 0x4a7   :  { %v2404_v51 = vadd.f32 %v872_v47, %v870_v49  ;;  %v1221_v42 = vld [vmem:[#allocation11 + $0x368] sm:$0xff] }
 0x4a8   :  { %v862_v52 = vmul.f32 %v1738_v40, %v861_v50  ;;  %903 = vmatpush.msrb.mxu0 %v885_v0  ;;  %v922_v50 = vld [vmem:[#allocation19 + $0x30] sm:$0xff]  ;;  %v917_v0 = vld [vmem:[#allocation19 + $0x8] sm:$0xff] }
 0x4a9   :  { %1013 = vmatmul.f32.vlgmr.msrb.gmra.mxu1 %v2404_v51 }
 0x4aa   :  { %v866_v53 = vsel %vm865_vm7, %v1738_v40, %v862_v52  ;;  %904 = vmatpush.msrb.mxu0 %v884_v35  ;;  %v921_v52 = vld [vmem:[#allocation19 + $0x28] sm:$0xff]  ;;  %v916_v35 = vld [vmem:[#allocation19] sm:$0xff] }
 0x4ab   :  { %v868_v54 = vmul.f32 %v866_v53, %v2387_v2  ;;  %v882_v2 = vld [vmem:[#allocation16 + $0x20] sm:$0xff] }
 0x4ac   :  { %905 = vmatpush.msrb.mxu0 %v883_v1 }
 0x4ad   :  { %v871_v55 = vmul.f32 %v869_v43, %v868_v54  ;;  %v929_v43 = vld [vmem:[#allocation19 + $0x68] sm:$0xff] }
 0x4ae   :  { %906 = vmatpush.msrb.mxu0 %v882_v2  ;;  %935 = vmatpush.msrb.mxu3 %v929_v43  ;;  %v1258_v43 = vld [vmem:[#allocation11 + $0x3e8] sm:$0xff] }
 0x4af   :  { %v2408_v56 = vadd.f32 %v872_v47, %v871_v55  ;;  %v925_v47 = vld [vmem:[#allocation19 + $0x48] sm:$0xff]  ;;  %v920_v55 = vld [vmem:[#allocation19 + $0x20] sm:$0xff] }
 0x4b0   :  { %907 = vmatpush.msrb.mxu0 %v881_v62  ;;  %936 = vmatpush.msrb.mxu3 %v928_v44  ;;  %v1146_v44 = vld [vmem:[#allocation11 + $0x260] sm:$0xff] }
 0x4b1   :  { %1016 = vmatmul.f32.gmra.mxu1 %v2408_v56 }
 0x4b2   :  { %908 = vmatpush.msrb.mxu0 %v880_v4  ;;  %937 = vmatpush.msrb.mxu3 %v927_v45  ;;  %v876_v4 = vld [vmem:[%s2592_s21] sm:$0x3]  ;;  %v1183_v45 = vld [vmem:[#allocation11 + $0x2e0] sm:$0xff] }
 0x4b3   :  { %v1039_v5 = vperm.slane %v876_v4, 1  ;;  %v932_v9 = vperm.slane %v876_v4, 0 }
 0x4b4   :  { %909 = vmatpush.msrb.mxu0 %v879_v6  ;;  %938 = vmatpush.msrb.mxu3 %v926_v46  ;;  %v1220_v46 = vld [vmem:[#allocation11 + $0x360] sm:$0xff] }
 0x4b6   :  { %910 = vmatpush.msrb.mxu0 %v878_v8  ;;  %939 = vmatpush.msrb.mxu3 %v925_v47  ;;  %v1257_v47 = vld [vmem:[#allocation11 + $0x3e0] sm:$0xff] }
 0x4b8   :  { %940 = vmatpush.msrb.mxu3 %v924_v48  ;;  %v1145_v48 = vld [vmem:[#allocation11 + $0x258] sm:$0xff] }
 0x4ba   :  { %941 = vmatpush.msrb.mxu3 %v923_v39  ;;  %v1219_v39 = vld [vmem:[#allocation11 + $0x358] sm:$0xff] }
 0x4bc   :  { %942 = vmatpush.msrb.mxu3 %v922_v50  ;;  %v1144_v50 = vld [vmem:[#allocation11 + $0x250] sm:$0xff] }
 0x4be   :  { %943 = vmatpush.msrb.mxu3 %v921_v52  ;;  %v1181_v52 = vld [vmem:[#allocation11 + $0x2d0] sm:$0xff] }
 0x4c0   :  { %944 = vmatpush.msrb.mxu3 %v920_v55  ;;  %v1143_v55 = vld [vmem:[#allocation11 + $0x248] sm:$0xff] }
 0x4c2   :  { %945 = vmatpush.msrb.mxu3 %v919_v58  ;;  %v1217_v58 = vld [vmem:[#allocation11 + $0x348] sm:$0xff] }
 0x4c4   :  { %946 = vmatpush.msrb.mxu3 %v918_v29  ;;  %v1179_v29 = vld [vmem:[#allocation11 + $0x2c0] sm:$0xff] }
 0x4c6   :  { %947 = vmatpush.msrb.mxu3 %v917_v0  ;;  %v1216_v0 = vld [vmem:[#allocation11 + $0x340] sm:$0xff] }
 0x4c8   :  { %948 = vmatpush.msrb.mxu3 %v916_v35  ;;  %v1253_v35 = vld [vmem:[#allocation11 + $0x3c0] sm:$0xff] }
 0x4ca   :  { %1187 = vmatpush.msra.mxu3 %v1186_v32  ;;  %v1172_v32 = vld [vmem:[#allocation11 + $0x288] sm:$0xff] }
 0x4f5   :  { %v807_v12 = vpop.xlane.xlu0 %806 }
 0x4f6   :  { %v808_v14 = vmul.f32 0.03125, %v807_v12 }
 0x4f8   :  { %v809_v16 = vadd.f32 1e-05, %v808_v14 }
 0x4fa   :  { %1739 = vrsqrt.f32 %v809_v16  ;;  %vm816_vm9 = vweird.f32 %v809_v16 }
 0x500   :  { %v1740_v22 = vpop.eup %1739 }
 0x501   :  { %v811_v23 = vmul.f32 %v1740_v22, %v809_v16  ;;  %vm817_vm8 = vweird.f32 %v1740_v22 }
 0x502   :  { %vm818_vm10 = vmor %vm816_vm9, %vm817_vm8 }
 0x503   :  { %v812_v25 = vmul.f32 %v1740_v22, %v811_v23 }
 0x505   :  { %v813_v26 = vmul.f32 0.5, %v812_v25 }
 0x507   :  { %v814_v28 = vsub.f32 1.5, %v813_v26 }
 0x509   :  { %v815_v31 = vmul.f32 %v1740_v22, %v814_v28 }
 0x50b   :  { %v819_v34 = vsel %vm818_vm10, %v1740_v22, %v815_v31  ;;  %v1149_v31 = vld [vmem:[#allocation11 + $0x278] sm:$0xff] }
 0x50c   :  { %v820_v36 = vmul.f32 %v819_v34, %v2392_v17  ;;  %v875_v17 = vld [vmem:[#allocation17] sm:$0x3]  ;;  %1150 = vmatpush.msra.mxu0 %v1149_v31  ;;  %v1260_v34 = vld [vmem:[#allocation11 + $0x3f8] sm:$0xff] }
 0x50d   :  { %v996_v49 = vperm.slane %v875_v17, 1  ;;  %v894_v1 = vperm.slane %v875_v17, 0  ;;  %1261 = vmatpush.msra.mxu2 %v1260_v34  ;;  %v1182_v17 = vld [vmem:[#allocation11 + $0x2d8] sm:$0xff]  ;;  %v1246_v34 = vld [vmem:[#allocation11 + $0x388] sm:$0xff] }
 0x50e   :  { %v822_v38 = vmul.f32 %v821_v33, %v820_v36  ;;  %v1223_v33 = vld [vmem:[#allocation11 + $0x378] sm:$0xff]  ;;  %v1148_v36 = vld [vmem:[#allocation11 + $0x270] sm:$0xff] }
 0x50f   :  { %1224 = vmatpush.msra.mxu1 %v1223_v33  ;;  %1151 = vmatpush.msra.mxu0 %v1148_v36  ;;  %v1209_v33 = vld [vmem:[#allocation11 + $0x308] sm:$0xff]  ;;  %v1134_v36 = vld [vmem:[#allocation11 + $0x200] sm:$0xff] }
 0x510   :  { %v824_v40 = vadd.f32 %v823_v37, %v822_v38  ;;  %v1185_v37 = vld [vmem:[#allocation11 + $0x2f0] sm:$0xff] }
 0x511   :  { %1188 = vmatpush.msra.mxu3 %v1185_v37  ;;  %v1259_v38 = vld [vmem:[#allocation11 + $0x3f0] sm:$0xff]  ;;  %v1171_v37 = vld [vmem:[#allocation11 + $0x280] sm:$0xff] }
 0x512   :  { %911 = vmatmul.f32.vlgmr.msrb.gmra.mxu0 %v824_v40  ;;  %1262 = vmatpush.msra.mxu2 %v1259_v38  ;;  %v1208_v38 = vld [vmem:[#allocation11 + $0x300] sm:$0xff] }
 0x513   :  { %1189 = vmatpush.msra.mxu3 %v1184_v41 }
 0x514   :  { %1263 = vmatpush.msra.mxu2 %v1258_v43 }
 0x515   :  { %1190 = vmatpush.msra.mxu3 %v1183_v45 }
 0x516   :  { %1264 = vmatpush.msra.mxu2 %v1257_v47 }
 0x517   :  { %1191 = vmatpush.msra.mxu3 %v1182_v17 }
 0x519   :  { %1192 = vmatpush.msra.mxu3 %v1181_v52 }
 0x526   :  { %v1014_v53 = vpop.f32.mrf.mxu1 }
 0x527   :  { %v1015_v54 = vadd.f32 %v1014_v53, %v996_v49  ;;  %v1218_v53 = vld [vmem:[#allocation11 + $0x350] sm:$0xff] }
 0x529   :  { %v1020_v57 = vmax.f32 %v1015_v54, 0.0  ;;  %v1255_v54 = vld [vmem:[#allocation11 + $0x3d0] sm:$0xff] }
 0x52b   :  { %1056 = vmatmul.f32.vlgmr.msrb.gmra.mxu2 %v1020_v57  ;;  %v1180_v57 = vld [vmem:[#allocation11 + $0x2c8] sm:$0xff] }
 0x52c   :  { %1193 = vmatpush.msra.mxu3 %v1180_v57  ;;  %v2460_v57 = vld [vmem:[#allocation2 + $0x58] sm:$0xff] }
 0x52e   :  { %v1017_v59 = vpop.f32.mrf.mxu1  ;;  %1194 = vmatpush.msra.mxu3 %v1179_v29  ;;  %v2471_v29 = vld [vmem:[%s2593_s22] sm:$0xf] }
 0x52f   :  { %v1018_v61 = vadd.f32 %v1017_v59, %v996_v49  ;;  %v1256_v49 = vld [vmem:[#allocation11 + $0x3d8] sm:$0xff]  ;;  %v1254_v59 = vld [vmem:[#allocation11 + $0x3c8] sm:$0xff] }
 0x530   :  { %1265 = vmatpush.msra.mxu2 %v1256_v49 }
 0x531   :  { %v1021_v63 = vmax.f32 %v1018_v61, 0.0  ;;  %v2434_v61 = vld [vmem:[#allocation20] sm:$0xf] }
 0x532   :  { %1266 = vmatpush.msra.mxu2 %v1255_v54  ;;  %v2437_v4 = vadd.f32 1e-05, %v2434_v61  ;;  %v2456_v54 = vld [vmem:[#allocation2 + $0x60] sm:$0xff] }
 0x533   :  { %1059 = vmatmul.f32.gmra.mxu2 %v1021_v63  ;;  %v1142_v63 = vld [vmem:[#allocation11 + $0x240] sm:$0xff] }
 0x534   :  { %1267 = vmatpush.msra.mxu2 %v1254_v59  ;;  %1741 = vrsqrt.f32 %v2437_v4  ;;  %vm1123_vm11 = vweird.f32 %v2437_v4 }
 0x536   :  { %1268 = vmatpush.msra.mxu2 %v1253_v35 }
 0x58f   :  { %v912_v2 = vpop.f32.mrf.mxu0 }
 0x590   :  { %v913_v62 = vadd.f32 %v912_v2, %v894_v1  ;;  %v1141_v1 = vld [vmem:[#allocation11 + $0x238] sm:$0xff] }
 0x591   :  { %v1178_v2 = vld [vmem:[#allocation11 + $0x2b8] sm:$0xff] }
 0x592   :  { %v915_v3 = vmax.f32 %v913_v62, 0.0  ;;  %v1215_v62 = vld [vmem:[#allocation11 + $0x338] sm:$0xff]  ;;  %1195 = vmatpush.msra.mxu3 %v1178_v2 }
 0x594   :  { %949 = vmatmul.f32.vlgmr.msrb.gmra.mxu3 %v915_v3  ;;  %v1252_v3 = vld [vmem:[#allocation11 + $0x3b8] sm:$0xff] }
 0x595   :  { %1269 = vmatpush.msra.mxu2 %v1252_v3 }
 0x5ae   :  { %v1057_v6 = vpop.f32.mrf.mxu2 }
 0x5af   :  { %v1058_v7 = vadd.f32 %v1057_v6, %v1039_v5  ;;  %v1177_v6 = vld [vmem:[#allocation11 + $0x2b0] sm:$0xff] }
 0x5b0   :  { %1196 = vmatpush.msra.mxu3 %v1177_v6 }
 0x5b1   :  { %v1063_v8 = vadd.f32 %v1058_v7, %v2404_v51  ;;  %v1214_v7 = vld [vmem:[#allocation11 + $0x330] sm:$0xff] }
 0x5b3   :  { %1065 = vadd.xlane.f32.xlu2 %v1063_v8 }
 0x5b6   :  { %v1060_v13 = vpop.f32.mrf.mxu2 }
 0x5b7   :  { %v1061_v14 = vadd.f32 %v1060_v13, %v1039_v5  ;;  %v1140_v5 = vld [vmem:[#allocation11 + $0x230] sm:$0xff]  ;;  %v1138_v13 = vld [vmem:[#allocation11 + $0x220] sm:$0xff] }
 0x5b9   :  { %v1064_v15 = vadd.f32 %v1061_v14, %v2408_v56  ;;  %v1175_v14 = vld [vmem:[#allocation11 + $0x2a0] sm:$0xff] }
 0x617   :  { %v950_v10 = vpop.f32.mrf.mxu3 }
 0x618   :  { %v951_v11 = vadd.f32 %v950_v10, %v932_v9  ;;  %v1139_v9 = vld [vmem:[#allocation11 + $0x228] sm:$0xff] }
 0x619   :  { %v1176_v10 = vld [vmem:[#allocation11 + $0x2a8] sm:$0xff] }
 0x61a   :  { %v953_v12 = vadd.f32 %v951_v11, %v824_v40  ;;  %v1147_v40 = vld [vmem:[#allocation11 + $0x268] sm:$0xff]  ;;  %1197 = vmatpush.msra.mxu3 %v1176_v10 }
 0x61b   :  { %1152 = vmatpush.msra.mxu0 %v1147_v40  ;;  %v1213_v11 = vld [vmem:[#allocation11 + $0x328] sm:$0xff]  ;;  %v1245_v40 = vld [vmem:[#allocation11 + $0x380] sm:$0xff] }
 0x61c   :  { %954 = vadd.xlane.f32.xlu0 %v953_v12  ;;  %1198 = vmatpush.msra.mxu3 %v1175_v14  ;;  %v2490_v14 = vld [vmem:[#allocation2 + $0x38] sm:$0xff] }
 0x61d   :  { %1153 = vmatpush.msra.mxu0 %v1146_v44 }
 0x61f   :  { %1154 = vmatpush.msra.mxu0 %v1145_v48  ;;  %v2448_v48 = vld [vmem:[#allocation2 + $0x70] sm:$0xff] }
 0x621   :  { %1155 = vmatpush.msra.mxu0 %v1144_v50  ;;  %v2453_v50 = vld [vmem:[#allocation2 + $0x68] sm:$0xff] }
 0x623   :  { %1156 = vmatpush.msra.mxu0 %v1143_v55 }
 0x624   :  { %1067 = vadd.xlane.f32.xlu0 %v1064_v15 }
 0x625   :  { %1157 = vmatpush.msra.mxu0 %v1142_v63  ;;  %v2465_v63 = vld [vmem:[#allocation2 + $0x50] sm:$0xff] }
 0x626   :  { %v1066_v16 = vpop.xlane.xlu2 %1065 }
 0x627   :  { %v1069_v20 = vmul.f32 0.03125, %v1066_v16  ;;  %1158 = vmatpush.msra.mxu0 %v1141_v1  ;;  %v1249_v16 = vld [vmem:[#allocation11 + $0x3a0] sm:$0xff] }
 0x628   :  { %v2473_v1 = vld [vmem:[#allocation2 + $0x48] sm:$0xff] }
 0x629   :  { %v1071_v51 = vsub.f32 %v1063_v8, %v1069_v20  ;;  %1159 = vmatpush.msra.mxu0 %v1140_v5  ;;  %v1251_v8 = vld [vmem:[#allocation11 + $0x3b0] sm:$0xff]  ;;  %v1211_v20 = vld [vmem:[#allocation11 + $0x318] sm:$0xff] }
 0x62a   :  { %1270 = vmatpush.msra.mxu2 %v1251_v8 }
 0x62b   :  { %v2425_v27 = vmul.f32 %v2379_v60, %v1071_v51  ;;  %1160 = vmatpush.msra.mxu0 %v1139_v9  ;;  %v1136_v51 = vld [vmem:[#allocation11 + $0x210] sm:$0xff]  ;;  %v2485_v9 = vld [vmem:[#allocation2 + $0x40] sm:$0xff] }
 0x62d   :  { %v1075_v28 = vmul.f32 %v2425_v27, %v2425_v27  ;;  %1161 = vmatpush.msra.mxu0 %v1138_v13 }
 0x68f   :  { %v955_v18 = vpop.xlane.xlu0 %954 }
 0x690   :  { %v956_v19 = vmul.f32 0.03125, %v955_v18  ;;  %v1137_v18 = vld [vmem:[#allocation11 + $0x218] sm:$0xff] }
 0x691   :  { %1162 = vmatpush.msra.mxu0 %v1137_v18 }
 0x692   :  { %v957_v21 = vsub.f32 %v953_v12, %v956_v19  ;;  %v1250_v12 = vld [vmem:[#allocation11 + $0x3a8] sm:$0xff]  ;;  %v1174_v19 = vld [vmem:[#allocation11 + $0x298] sm:$0xff] }
 0x693   :  { %1271 = vmatpush.msra.mxu2 %v1250_v12  ;;  %1199 = vmatpush.msra.mxu3 %v1174_v19  ;;  %v977_v12 = vperm.slane %v2471_v29, 1 }
 0x694   :  { %v2420_v22 = vmul.f32 %v2379_v60, %v957_v21  ;;  %v1248_v21 = vld [vmem:[#allocation11 + $0x398] sm:$0xff]  ;;  %1163 = vmatpush.msra.mxu0 %v1136_v51 }
 0x695   :  { %1272 = vmatpush.msra.mxu2 %v1249_v16 }
 0x696   :  { %v959_v23 = vmul.f32 %v2420_v22, %v2420_v22 }
 0x697   :  { %v1068_v24 = vpop.xlane.xlu0 %1067  ;;  %1273 = vmatpush.msra.mxu2 %v1248_v21  ;;  %v2497_v21 = vld [vmem:[#allocation2 + $0x30] sm:$0xff] }
 0x698   :  { %v1070_v25 = vmul.f32 0.03125, %v1068_v24  ;;  %960 = vadd.xlane.f32.xlu1 %v959_v23  ;;  %v1173_v23 = vld [vmem:[#allocation11 + $0x290] sm:$0xff] }
 0x699   :  { %1200 = vmatpush.msra.mxu3 %v1173_v23 }
 0x69a   :  { %v1072_v26 = vsub.f32 %v1064_v15, %v1070_v25  ;;  %v1212_v15 = vld [vmem:[#allocation11 + $0x320] sm:$0xff]  ;;  %v1210_v25 = vld [vmem:[#allocation11 + $0x310] sm:$0xff] }
 0x69b   :  { %1201 = vmatpush.msra.mxu3 %v1172_v32  ;;  %v1107_v32 = vperm.slane %v2471_v29, 2 }
 0x69c   :  { %v2428_v56 = vmul.f32 %v2379_v60, %v1072_v26  ;;  %v1222_v60 = vld [vmem:[#allocation11 + $0x370] sm:$0xff] }
 0x69d   :  { %1225 = vmatpush.msra.mxu1 %v1222_v60  ;;  %v1247_v26 = vld [vmem:[#allocation11 + $0x390] sm:$0xff]  ;;  %1202 = vmatpush.msra.mxu3 %v1171_v37 }
 0x69e   :  { %v1076_v30 = vmul.f32 %v2428_v56, %v2428_v56  ;;  %1274 = vmatpush.msra.mxu2 %v1247_v26 }
 0x69f   :  { %1226 = vmatpush.msra.mxu1 %v1221_v42  ;;  %v2444_v42 = vld [vmem:[#allocation2 + $0x78] sm:$0xff] }
 0x6a0   :  { %1077 = vadd.xlane.f32.xlu1 %v1075_v28  ;;  %1079 = vadd.xlane.f32.xlu2 %v1076_v30  ;;  %v1135_v28 = vld [vmem:[#allocation11 + $0x208] sm:$0xff]  ;;  %v2440_v30 = vpop.eup %1741 }
 0x6a1   :  { %1227 = vmatpush.msra.mxu1 %v1220_v46  ;;  %1164 = vmatpush.msra.mxu0 %v1135_v28  ;;  %v1118_v41 = vmul.f32 %v2440_v30, %v2437_v4  ;;  %vm1124_vm12 = vweird.f32 %v2440_v30  ;;  %v1129_v28 = vperm.slane %v2434_v61, 0 }
 0x6a2   :  { %1275 = vmatpush.msra.mxu2 %v1246_v34  ;;  %1355 = vmatpush.msrb.mxu3 %v2444_v42  ;;  %vm2479_vm15 = vmor %vm1123_vm11, %vm1124_vm12 }
 0x6a3   :  { %1228 = vmatpush.msra.mxu1 %v1219_v39  ;;  %1165 = vmatpush.msra.mxu0 %v1134_v36  ;;  %v1119_v45 = vmul.f32 %v2440_v30, %v1118_v41  ;;  %v1131_v36 = vperm.slane %v2434_v61, 1 }
 0x6a4   :  { %1276 = vmatpush.msra.mxu2 %v1245_v40  ;;  %1356 = vmatpush.msrb.mxu3 %v2448_v48  ;;  %v1773_v40 = vld [vmem:[#allocation2 + $0x18] sm:$0xff] }
 0x6a5   :  { %1229 = vmatpush.msra.mxu1 %v1218_v53  ;;  %v1120_v53 = vmul.f32 0.5, %v1119_v45  ;;  %v1774_v45 = vld [vmem:[#allocation2 + $0x10] sm:$0xff] }
 0x6a6   :  { %1357 = vmatpush.msrb.mxu3 %v2453_v50 }
 0x6a7   :  { %1230 = vmatpush.msra.mxu1 %v1217_v58  ;;  %v1121_v59 = vsub.f32 1.5, %v1120_v53  ;;  %v1777_v53 = vld [vmem:[%s2620_s0] sm:$0xff] }
 0x6a8   :  { %1358 = vmatpush.msrb.mxu3 %v2456_v54 }
 0x6a9   :  { %1231 = vmatpush.msra.mxu1 %v1216_v0  ;;  %v1122_v5 = vmul.f32 %v2440_v30, %v1121_v59 }
 0x6aa   :  { %1359 = vmatpush.msrb.mxu3 %v2460_v57 }
 0x6ab   :  { %1232 = vmatpush.msra.mxu1 %v1215_v62  ;;  %v1126_v16 = vsel %vm2479_vm15, %v2440_v30, %v1122_v5 }
 0x6ac   :  { %1360 = vmatpush.msrb.mxu3 %v2465_v63 }
 0x6ad   :  { %1233 = vmatpush.msra.mxu1 %v1214_v7  ;;  %v975_v7 = vperm.slane %v2471_v29, 0 }
 0x6ae   :  { %1361 = vmatpush.msrb.mxu3 %v2473_v1 }
 0x6af   :  { %1234 = vmatpush.msra.mxu1 %v1213_v11 }
 0x6b0   :  { %1362 = vmatpush.msrb.mxu3 %v2485_v9 }
 0x6b1   :  { %1235 = vmatpush.msra.mxu1 %v1212_v15 }
 0x6b2   :  { %1363 = vmatpush.msrb.mxu3 %v2490_v14 }
 0x6b3   :  { %1236 = vmatpush.msra.mxu1 %v1211_v20  ;;  %v1114_v20 = vperm.slane %v2434_v61, 2  ;;  %v1776_v61 = vld [vmem:[#allocation2] sm:$0xff] }
 0x6b4   :  { %1364 = vmatpush.msrb.mxu3 %v2497_v21 }
 0x6b5   :  { %1237 = vmatpush.msra.mxu1 %v1210_v25  ;;  %v2500_v25 = vld [vmem:[#allocation2 + $0x28] sm:$0xff] }
 0x6b6   :  { %1365 = vmatpush.msrb.mxu3 %v2500_v25 }
 0x6b7   :  { %1238 = vmatpush.msra.mxu1 %v1209_v33  ;;  %v1772_v33 = vld [vmem:[#allocation2 + $0x20] sm:$0xff] }
 0x6b8   :  { %1366 = vmatpush.msrb.mxu3 %v1772_v33 }
 0x6b9   :  { %1239 = vmatpush.msra.mxu1 %v1208_v38  ;;  %v1110_v38 = vperm.slane %v2471_v29, 3 }
 0x6ba   :  { %1367 = vmatpush.msrb.mxu3 %v1773_v40 }
 0x6bc   :  { %1368 = vmatpush.msrb.mxu3 %v1774_v45 }
 0x70b   :  { %v961_v24 = vpop.xlane.xlu1 %960 }
 0x70c   :  { %v962_v31 = vmul.f32 0.03125, %v961_v24  ;;  %v1127_v24 = vperm.slane %v1126_v16, 3 }
 0x70e   :  { %v963_v60 = vadd.f32 1e-05, %v962_v31 }
 0x710   :  { %1743 = vrsqrt.f32 %v963_v60  ;;  %vm970_vm14 = vweird.f32 %v963_v60 }
 0x713   :  { %v1078_v43 = vpop.xlane.xlu1 %1077  ;;  %v1080_v44 = vpop.xlane.xlu2 %1079 }
 0x714   :  { %v1081_v46 = vmul.f32 0.03125, %v1078_v43  ;;  %v1082_v47 = vmul.f32 0.03125, %v1080_v44 }
 0x716   :  { %v1744_v17 = vpop.eup %1743  ;;  %v1083_v39 = vadd.f32 1e-05, %v1081_v46  ;;  %v2451_v49 = vadd.f32 1e-05, %v1082_v47 }
 0x717   :  { %v965_v52 = vmul.f32 %v1744_v17, %v963_v60  ;;  %vm971_vm13 = vweird.f32 %v1744_v17 }
 0x718   :  { %1745 = vrsqrt.f32 %v1083_v39  ;;  %vm972_vm2 = vmor %vm970_vm14, %vm971_vm13  ;;  %vm1091_vm4 = vweird.f32 %v1083_v39  ;;  %vm1101_vm7 = vweird.f32 %v2451_v49 }
 0x719   :  { %v966_v55 = vmul.f32 %v1744_v17, %v965_v52  ;;  %1747 = vrsqrt.f32 %v2451_v49 }
 0x71b   :  { %v967_v58 = vmul.f32 0.5, %v966_v55 }
 0x71d   :  { %v968_v0 = vsub.f32 1.5, %v967_v58  ;;  %v1778_v58 = vld [vmem:[%s2619_s25] sm:$0xff] }
 0x71e   :  { %v1746_v35 = vpop.eup %1745 }
 0x71f   :  { %v1748_v2 = vpop.eup %1747  ;;  %v969_v62 = vmul.f32 %v1744_v17, %v968_v0  ;;  %v1086_v3 = vmul.f32 %v1746_v35, %v1083_v39  ;;  %vm1092_vm3 = vweird.f32 %v1746_v35 }
 0x720   :  { %v1096_v8 = vmul.f32 %v1748_v2, %v2451_v49  ;;  %vm1093_vm5 = vmor %vm1091_vm4, %vm1092_vm3  ;;  %vm1102_vm6 = vweird.f32 %v1748_v2 }
 0x721   :  { %v973_v10 = vsel %vm972_vm2, %v1744_v17, %v969_v62  ;;  %v1087_v11 = vmul.f32 %v1746_v35, %v1086_v3  ;;  %vm1103_vm8 = vmor %vm1101_vm7, %vm1102_vm6  ;;  %v1775_v17 = vld [vmem:[#allocation2 + $0x8] sm:$0xff] }
 0x722   :  { %v974_v13 = vmul.f32 %v973_v10, %v2420_v22  ;;  %v1097_v4 = vmul.f32 %v1748_v2, %v1096_v8  ;;  %1369 = vmatpush.msrb.mxu3 %v1775_v17 }
 0x723   :  { %v1088_v15 = vmul.f32 0.5, %v1087_v11 }
 0x724   :  { %v976_v18 = vmul.f32 %v975_v7, %v974_v13  ;;  %v1098_v19 = vmul.f32 0.5, %v1097_v4  ;;  %1370 = vmatpush.msrb.mxu3 %v1776_v61 }
 0x725   :  { %v1089_v51 = vsub.f32 1.5, %v1088_v15 }
 0x726   :  { %v978_v22 = vadd.f32 %v977_v12, %v976_v18  ;;  %v1099_v23 = vsub.f32 1.5, %v1098_v19  ;;  %v1781_v19 = vld [vmem:[%s2621_s9] sm:$0xff] }
 0x727   :  { %v1090_v26 = vmul.f32 %v1746_v35, %v1089_v51  ;;  %v1473_v51 = vld [vmem:[#allocation13 + $0x168] sm:$0xff] }
 0x728   :  { %v1100_v30 = vmul.f32 %v1748_v2, %v1099_v23  ;;  %v1115_v31 = vsub.f32 %v978_v22, %v1114_v20  ;;  %v1475_v20 = vld [vmem:[#allocation13 + $0x178] sm:$0xff]  ;;  %v1472_v22 = vld [vmem:[#allocation13 + $0x160] sm:$0xff] }
 0x729   :  { %v1094_v34 = vsel %vm1093_vm5, %v1746_v35, %v1090_v26  ;;  %v1471_v23 = vld [vmem:[#allocation13 + $0x158] sm:$0xff]  ;;  %v1468_v26 = vld [vmem:[#allocation13 + $0x140] sm:$0xff] }
 0x72a   :  { %v1105_v37 = vmul.f32 %v1094_v34, %v2425_v27  ;;  %v1128_v60 = vmul.f32 %v1127_v24, %v1115_v31  ;;  %v1104_v44 = vsel %vm1103_vm8, %v1748_v2, %v1100_v30  ;;  %v1470_v24 = vld [vmem:[#allocation13 + $0x150] sm:$0xff]  ;;  %v1465_v31 = vld [vmem:[#allocation13 + $0x128] sm:$0xff] }
 0x72b   :  { %v1106_v27 = vmul.f32 %v1104_v44, %v2428_v56  ;;  %v1466_v30 = vld [vmem:[#allocation13 + $0x130] sm:$0xff]  ;;  %v1458_v44 = vld [vmem:[#allocation14 + $0x2] sm:$0x3] }
 0x72c   :  { %v1130_v41 = vmul.f32 %v1129_v28, %v1128_v60  ;;  %v1108_v43 = vmul.f32 %v1107_v32, %v1105_v37  ;;  %v1467_v28 = vld [vmem:[#allocation13 + $0x138] sm:$0xff]  ;;  %v1462_v34 = vld [vmem:[#allocation13 + $0x110] sm:$0xff]  ;;  %v1460_v37 = vld [vmem:[#allocation13 + $0x100] sm:$0xff] }
 0x72d   :  { %v1109_v39 = vmul.f32 %v1107_v32, %v1106_v27  ;;  %v1464_v32 = vld [vmem:[#allocation13 + $0x120] sm:$0xff] }
 0x72e   :  { %v2509_v46 = vadd.f32 %v1131_v36, %v1130_v41  ;;  %v1111_v47 = vadd.f32 %v1110_v38, %v1108_v43  ;;  %v1461_v36 = vld [vmem:[#allocation13 + $0x108] sm:$0xff] }
 0x72f   :  { %v1112_v49 = vadd.f32 %v1110_v38, %v1109_v39  ;;  %v1546_v39 = vld [vmem:[#allocation16 + $0x170] sm:$0xff] }
 0x730   :  { %1166 = vmatmul.f32.vlgmr.msra.gmra.mxu0 %v2509_v46  ;;  %1203 = vmatmul.f32.vlgmr.msra.gmra.mxu3 %v2509_v46 }
 0x731   :  { %1240 = vmatmul.f32.vlgmr.msra.gmra.mxu1 %v2509_v46  ;;  %1277 = vmatmul.f32.vlgmr.msra.gmra.mxu2 %v1111_v47 }
 0x739   :  { %1280 = vmatmul.f32.gmra.mxu2 %v1112_v49 }
 0x7ad   :  { %v1167_v52 = vpop.f32.mrf.mxu0 }
 0x7ae   :  { %1322 = vmatpush.msrb.mxu1 %v1167_v52  ;;  %v1241_v55 = vpop.f32.mrf.mxu1 }
 0x7af   :  { %1695 = vmatmul.msk.f32.vlgmr.msrb.gmra.mxu1 %vm312_vm0, %v1777_v53 }
 0x7b0   :  { %1382 = vmatpush.msra.mxu1 %v2444_v42  ;;  %v1779_v42 = vld [vmem:[%s2620_s0 + $0x8] sm:$0xff] }
 0x7b2   :  { %1383 = vmatpush.msra.mxu1 %v2448_v48  ;;  %v1780_v48 = vld [vmem:[%s2619_s25 + $0x8] sm:$0xff] }
 0x7b3   :  { %v1204_v56 = vpop.f32.mrf.mxu3 }
 0x7b4   :  { %1299 = vmatpush.msrb.mxu0 %v1204_v56  ;;  %1384 = vmatpush.msra.mxu1 %v2453_v50  ;;  %v1278_v0 = vpop.f32.mrf.mxu2  ;;  %v2550_v56 = vld [vmem:[#allocation5] ss:$0 sm:$0xff] }
 0x7b5   :  { %1693 = vmatmul.msk.f32.vlgmr.msrb.gmra.mxu0 %vm312_vm0, %v1778_v58 }
 0x7b6   :  { %1345 = vmatpush.msra.mxu0 %v1241_v55  ;;  %1385 = vmatpush.msra.mxu1 %v2456_v54 }
 0x7b7   :  { %1696 = vmatmul.msk.f32.gmra.mxu1 %vm312_vm0, %v1779_v42  ;;  %v1545_v42 = vld [vmem:[#allocation16 + $0x168] sm:$0xff] }
 0x7b8   :  { %1386 = vmatpush.msra.mxu1 %v2460_v57 }
 0x7ba   :  { %1387 = vmatpush.msra.mxu1 %v2465_v63 }
 0x7bc   :  { %1388 = vmatpush.msra.mxu1 %v2473_v1  ;;  %v1281_v5 = vpop.f32.mrf.mxu2 }
 0x7bd   :  { %1694 = vmatmul.msk.f32.gmra.mxu0 %vm312_vm0, %v1780_v48 }
 0x7be   :  { %1389 = vmatpush.msra.mxu1 %v2485_v9 }
 0x7c0   :  { %1390 = vmatpush.msra.mxu1 %v2490_v14 }
 0x7c2   :  { %1391 = vmatpush.msra.mxu1 %v2497_v21  ;;  %v1474_v21 = vld [vmem:[#allocation13 + $0x170] sm:$0xff] }
 0x7c4   :  { %1392 = vmatpush.msra.mxu1 %v2500_v25  ;;  %v1469_v25 = vld [vmem:[#allocation13 + $0x148] sm:$0xff] }
 0x7c5   :  { %1697 = vmatmul.msk.f32.vlgmr.msra.gmra.mxu0 %vm312_vm0, %v1778_v58 }
 0x7c6   :  { %1393 = vmatpush.msra.mxu1 %v1772_v33  ;;  %v1463_v33 = vld [vmem:[#allocation13 + $0x118] sm:$0xff] }
 0x7c8   :  { %1394 = vmatpush.msra.mxu1 %v1773_v40 }
 0x7ca   :  { %1395 = vmatpush.msra.mxu1 %v1774_v45  ;;  %v1476_v45 = vperm.slane %v1458_v44, 0  ;;  %v1704_v44 = vld [vmem:[%s2592_s21 + $0x2] sm:$0x3] }
 0x7cc   :  { %1396 = vmatpush.msra.mxu1 %v1775_v17 }
 0x7cd   :  { %1698 = vmatmul.msk.f32.gmra.mxu0 %vm312_vm0, %v1780_v48  ;;  %v1543_v48 = vld [vmem:[#allocation16 + $0x158] sm:$0xff] }
 0x7ce   :  { %1397 = vmatpush.msra.mxu1 %v1776_v61  ;;  %v1547_v61 = vld [vmem:[#allocation16 + $0x178] sm:$0xff] }
 0x82c   :  { %v1324_v50 = vpop.f32.mrf.mxu1 }
 0x832   :  { %v1301_v54 = vpop.f32.mrf.mxu0 }
 0x833   :  { %v1353_v57 = vmul.f32 %v1324_v50, %v1301_v54  ;;  %v1542_v50 = vld [vmem:[#allocation16 + $0x150] sm:$0xff]  ;;  %v1541_v54 = vld [vmem:[#allocation16 + $0x148] sm:$0xff] }
 0x834   :  { %v1327_v59 = vpop.f32.mrf.mxu1 }
 0x835   :  { %1371 = vmatmul.f32.vlgmr.msrb.gmra.mxu3 %v1353_v57  ;;  %v1540_v57 = vld [vmem:[#allocation16 + $0x140] sm:$0xff] }
 0x83a   :  { %v1304_v63 = vpop.f32.mrf.mxu0 }
 0x83b   :  { %v1354_v29 = vmul.f32 %v1327_v59, %v1304_v63  ;;  %v1539_v59 = vld [vmem:[#allocation16 + $0x138] sm:$0xff]  ;;  %v1538_v63 = vld [vmem:[#allocation16 + $0x130] sm:$0xff] }
 0x83d   :  { %1374 = vmatmul.f32.gmra.mxu3 %v1354_v29  ;;  %v1537_v29 = vld [vmem:[#allocation16 + $0x128] sm:$0xff] }
 0x842   :  { %v1347_v9 = vpop.f32.mrf.mxu0 }
 0x84a   :  { %v1350_v4 = vpop.f32.mrf.mxu0 }
 0x8b8   :  { %v1372_v35 = vpop.f32.mrf.mxu3 }
 0x8b9   :  { %v1378_v1 = vmul.f32 0.35355338, %v1372_v35  ;;  %v1535_v35 = vld [vmem:[#allocation16 + $0x118] sm:$0xff] }
 0x8bb   :  { %v1380_v2 = vmul.f32 %v1378_v1, %v1278_v0  ;;  %v1536_v0 = vld [vmem:[#allocation16 + $0x120] sm:$0xff]  ;;  %v1534_v1 = vld [vmem:[#allocation16 + $0x110] sm:$0xff] }
 0x8bd   :  { %1398 = vmatmul.f32.vlgmr.msra.gmra.mxu1 %v1380_v2  ;;  %v1533_v2 = vld [vmem:[#allocation16 + $0x108] sm:$0xff] }
 0x8c0   :  { %v1375_v62 = vpop.f32.mrf.mxu3 }
 0x8c1   :  { %v1379_v3 = vmul.f32 0.35355338, %v1375_v62  ;;  %v1532_v62 = vld [vmem:[#allocation16 + $0x100] sm:$0xff] }
 0x8c3   :  { %v1381_v6 = vmul.f32 %v1379_v3, %v1281_v5  ;;  %v1586_v3 = vld [vmem:[#allocation19 + $0x178] sm:$0xff]  ;;  %v1585_v5 = vld [vmem:[#allocation19 + $0x170] sm:$0xff] }
 0x8c4   :  { %1588 = vmatpush.msra.mxu3 %v1586_v3 }
 0x8c5   :  { %1401 = vmatmul.f32.gmra.mxu1 %v1381_v6  ;;  %v1584_v6 = vld [vmem:[#allocation19 + $0x168] sm:$0xff] }
 0x8c6   :  { %1589 = vmatpush.msra.mxu3 %v1585_v5 }
 0x8c8   :  { %1590 = vmatpush.msra.mxu3 %v1584_v6 }
 0x93a   :  { %v1399_v7 = vpop.f32.mrf.mxu1 }
 0x93b   :  { %v1699_v8 = vclamps-f32 %v1399_v7, 5.0 }
 0x93d   :  { %v1409_v10 = vmul.f32 1.442695, %v1699_v8 }
 0x93f   :  { %1749 = vpow2.f32 %v1409_v10 }
 0x942   :  { %v1402_v11 = vpop.f32.mrf.mxu1 }
 0x943   :  { %v1700_v12 = vclamps-f32 %v1402_v11, 5.0  ;;  %v1582_v11 = vld [vmem:[#allocation19 + $0x158] sm:$0xff] }
 0x945   :  { %v1411_v13 = vmul.f32 1.442695, %v1700_v12  ;;  %v1750_v14 = vpop.eup %1749  ;;  %v1581_v12 = vld [vmem:[#allocation19 + $0x150] sm:$0xff] }
 0x946   :  { %v1413_v18 = vmul.f32 %v1750_v14, %v1347_v9  ;;  %v1583_v9 = vld [vmem:[#allocation19 + $0x160] sm:$0xff] }
 0x947   :  { %1751 = vpow2.f32 %v1411_v13  ;;  %1591 = vmatpush.msra.mxu3 %v1583_v9  ;;  %v1580_v13 = vld [vmem:[#allocation19 + $0x148] sm:$0xff] }
 0x949   :  { %1592 = vmatpush.msra.mxu3 %v1582_v11 }
 0x94b   :  { %1593 = vmatpush.msra.mxu3 %v1581_v12 }
 0x94d   :  { %v1752_v15 = vpop.eup %1751  ;;  %1594 = vmatpush.msra.mxu3 %v1580_v13 }
 0x94e   :  { %v1414_v16 = vmul.f32 %v1752_v15, %v1350_v4  ;;  %1449 = vmatpush.msrb.mxu0 %v1752_v15  ;;  %v1579_v4 = vld [vmem:[#allocation19 + $0x140] sm:$0xff]  ;;  %v1578_v15 = vld [vmem:[#allocation19 + $0x138] sm:$0xff] }
 0x94f   :  { %1595 = vmatpush.msra.mxu3 %v1579_v4 }
 0x950   :  { %1429 = vmatpush.msrb.mxu2 %v1414_v16  ;;  %1450 = vmatpush.msrb.mxu0 %v1750_v14 }
 0x951   :  { %1702 = vmatmul.msk.f32.vlgmr.msrb.gmra.mxu0 %vm286_vm1, %v1781_v19  ;;  %1596 = vmatpush.msra.mxu3 %v1578_v15 }
 0x952   :  { %1430 = vmatpush.msrb.mxu2 %v1413_v18  ;;  %1549 = vmatpush.msra.mxu0 %v1547_v61  ;;  %v1577_v18 = vld [vmem:[#allocation19 + $0x130] sm:$0xff] }
 0x953   :  { %1701 = vmatmul.msk.f32.vlgmr.msrb.gmra.mxu2 %vm286_vm1, %v1781_v19  ;;  %1597 = vmatpush.msra.mxu3 %v1577_v18 }
 0x954   :  { %1477 = vmatpush.msra.mxu2 %v1475_v20  ;;  %1550 = vmatpush.msra.mxu0 %v1546_v39  ;;  %v1576_v20 = vld [vmem:[#allocation19 + $0x128] sm:$0xff] }
 0x955   :  { %1598 = vmatpush.msra.mxu3 %v1576_v20 }
 0x956   :  { %1478 = vmatpush.msra.mxu2 %v1474_v21  ;;  %1551 = vmatpush.msra.mxu0 %v1545_v42 }
 0x958   :  { %1479 = vmatpush.msra.mxu2 %v1473_v51  ;;  %v1575_v51 = vld [vmem:[#allocation19 + $0x120] sm:$0xff] }
 0x959   :  { %1599 = vmatpush.msra.mxu3 %v1575_v51 }
 0x95a   :  { %1480 = vmatpush.msra.mxu2 %v1472_v22 }
 0x95c   :  { %1481 = vmatpush.msra.mxu2 %v1471_v23  ;;  %v1703_v23 = vld [vmem:[%s2588_s17 + $0x4] sm:$0xf] }
 0x95e   :  { %1482 = vmatpush.msra.mxu2 %v1470_v24  ;;  %v1574_v24 = vld [vmem:[#allocation19 + $0x118] sm:$0xff] }
 0x95f   :  { %1600 = vmatpush.msra.mxu3 %v1574_v24 }
 0x960   :  { %1483 = vmatpush.msra.mxu2 %v1469_v25 }
 0x962   :  { %1484 = vmatpush.msra.mxu2 %v1468_v26  ;;  %v1521_v26 = vperm.slane %v1703_v23, 0 }
 0x964   :  { %1485 = vmatpush.msra.mxu2 %v1467_v28 }
 0x966   :  { %1486 = vmatpush.msra.mxu2 %v1466_v30 }
 0x968   :  { %1487 = vmatpush.msra.mxu2 %v1465_v31  ;;  %v1523_v31 = vperm.slane %v1703_v23, 1 }
 0x96a   :  { %1488 = vmatpush.msra.mxu2 %v1464_v32 }
 0x96c   :  { %1489 = vmatpush.msra.mxu2 %v1463_v33 }
 0x96e   :  { %1490 = vmatpush.msra.mxu2 %v1462_v34  ;;  %v1573_v34 = vld [vmem:[#allocation19 + $0x110] sm:$0xff] }
 0x96f   :  { %1601 = vmatpush.msra.mxu3 %v1573_v34 }
 0x970   :  { %1491 = vmatpush.msra.mxu2 %v1461_v36  ;;  %v1572_v36 = vld [vmem:[#allocation19 + $0x108] sm:$0xff] }
 0x971   :  { %1602 = vmatpush.msra.mxu3 %v1572_v36 }
 0x972   :  { %1492 = vmatpush.msra.mxu2 %v1460_v37  ;;  %v1571_v37 = vld [vmem:[#allocation19 + $0x100] sm:$0xff] }
 0x973   :  { %1603 = vmatpush.msra.mxu3 %v1571_v37 }
 0x9ce   :  { %v1452_v60 = vpop.f32.mrf.mxu0 }
 0x9cf   :  { %v1453_v38 = vadd.f32 1e-06, %v1452_v60  ;;  %v1526_v60 = vld [vmem:[#allocation17 + $0x2] sm:$0x3] }
 0x9d1   :  { %1753 = vrcp.f32 %v1453_v38  ;;  %v1548_v38 = vperm.slane %v1526_v60, 0 }
 0x9d6   :  { %v1432_v40 = vpop.f32.mrf.mxu2 }
 0x9d7   :  { %v1754_v41 = vpop.eup %1753 }
 0x9d8   :  { %v1456_v43 = vmul.f32 %v1754_v41, %v1432_v40 }
 0x9da   :  { %1493 = vmatmul.f32.vlgmr.msra.gmra.mxu2 %v1456_v43 }
 0xa5d   :  { %v1494_v47 = vpop.f32.mrf.mxu2 }
 0xa5e   :  { %v1495_v17 = vadd.f32 %v1494_v47, %v1476_v45  ;;  %v1587_v45 = vperm.slane %v1704_v44, 0 }
 0xa60   :  { %v1499_v27 = vadd.f32 %v1495_v17, %v2509_v46  ;;  %v1544_v46 = vld [vmem:[#allocation16 + $0x160] sm:$0xff] }
 0xa61   :  { %1552 = vmatpush.msra.mxu0 %v1544_v46 }
 0xa62   :  { %1500 = vadd.xlane.f32.xlu0 %v1499_v27 }
 0xa63   :  { %1553 = vmatpush.msra.mxu0 %v1543_v48 }
 0xa65   :  { %1554 = vmatpush.msra.mxu0 %v1542_v50 }
 0xa67   :  { %1555 = vmatpush.msra.mxu0 %v1541_v54 }
 0xa69   :  { %1556 = vmatpush.msra.mxu0 %v1540_v57 }
 0xa6b   :  { %1557 = vmatpush.msra.mxu0 %v1539_v59 }
 0xa6d   :  { %1558 = vmatpush.msra.mxu0 %v1538_v63 }
 0xa6f   :  { %1559 = vmatpush.msra.mxu0 %v1537_v29 }
 0xa71   :  { %1560 = vmatpush.msra.mxu0 %v1536_v0 }
 0xa73   :  { %1561 = vmatpush.msra.mxu0 %v1535_v35 }
 0xa75   :  { %1562 = vmatpush.msra.mxu0 %v1534_v1 }
 0xa77   :  { %1563 = vmatpush.msra.mxu0 %v1533_v2 }
 0xa79   :  { %1564 = vmatpush.msra.mxu0 %v1532_v62 }
 0xad5   :  { %v1501_v49 = vpop.xlane.xlu0 %1500 }
 0xad6   :  { %v1502_v52 = vmul.f32 0.03125, %v1501_v49 }
 0xad8   :  { %v1503_v53 = vsub.f32 %v1499_v27, %v1502_v52 }
 0xada   :  { %v2553_v55 = vmul.f32 %v2550_v56, %v1503_v53 }
 0xadc   :  { %v1505_v58 = vmul.f32 %v2553_v55, %v2553_v55 }
 0xade   :  { %1506 = vadd.xlane.f32.xlu1 %v1505_v58 }
 0xb51   :  { %v1507_v7 = vpop.xlane.xlu1 %1506 }
 0xb52   :  { %v1508_v8 = vmul.f32 0.03125, %v1507_v7 }
 0xb54   :  { %v1509_v10 = vadd.f32 1e-05, %v1508_v8 }
 0xb56   :  { %1755 = vrsqrt.f32 %v1509_v10  ;;  %vm1516_vm1 = vweird.f32 %v1509_v10 }
 0xb5c   :  { %v1756_v14 = vpop.eup %1755 }
 0xb5d   :  { %v1511_v16 = vmul.f32 %v1756_v14, %v1509_v10  ;;  %vm1517_vm0 = vweird.f32 %v1756_v14 }
 0xb5e   :  { %vm1518_vm9 = vmor %vm1516_vm1, %vm1517_vm0 }
 0xb5f   :  { %v1512_v19 = vmul.f32 %v1756_v14, %v1511_v16 }
 0xb61   :  { %v1513_v21 = vmul.f32 0.5, %v1512_v19 }
 0xb63   :  { %v1514_v22 = vsub.f32 1.5, %v1513_v21 }
 0xb65   :  { %v1515_v25 = vmul.f32 %v1756_v14, %v1514_v22 }
 0xb67   :  { %v1519_v28 = vsel %vm1518_vm9, %v1756_v14, %v1515_v25 }
 0xb68   :  { %v1520_v30 = vmul.f32 %v1519_v28, %v2553_v55  ;;  %v1635_v55 = vld [vmem:[#allocation20 + $0x4] sm:$0xf] }
 0xb69   :  { %v1638_v58 = vadd.f32 1e-05, %v1635_v55  ;;  %v1636_v11 = vperm.slane %v1635_v55, 2  ;;  %v1651_v14 = vperm.slane %v1635_v55, 0  ;;  %v1653_v16 = vperm.slane %v1635_v55, 1 }
 0xb6a   :  { %v1522_v32 = vmul.f32 %v1521_v26, %v1520_v30 }
 0xb6b   :  { %1757 = vrsqrt.f32 %v1638_v58  ;;  %vm1645_vm10 = vweird.f32 %v1638_v58 }
 0xb6c   :  { %v1524_v33 = vadd.f32 %v1523_v31, %v1522_v32 }
 0xb6e   :  { %1565 = vmatmul.f32.vlgmr.msra.gmra.mxu0 %v1524_v33 }
 0xb71   :  { %v1758_v46 = vpop.eup %1757 }
 0xb72   :  { %v1640_v54 = vmul.f32 %v1758_v46, %v1638_v58  ;;  %vm1646_vm11 = vweird.f32 %v1758_v46 }
 0xb73   :  { %vm1647_vm14 = vmor %vm1645_vm10, %vm1646_vm11 }
 0xb74   :  { %v1641_v57 = vmul.f32 %v1758_v46, %v1640_v54 }
 0xb76   :  { %v1642_v29 = vmul.f32 0.5, %v1641_v57 }
 0xb78   :  { %v1643_v1 = vsub.f32 1.5, %v1642_v29 }
 0xb7a   :  { %v1644_v3 = vmul.f32 %v1758_v46, %v1643_v1 }
 0xb7c   :  { %v1648_v9 = vsel %vm1647_vm14, %v1758_v46, %v1644_v3 }
 0xb7d   :  { %v1649_v13 = vperm.slane %v1648_v9, 3 }
 0xbeb   :  { %v1566_v40 = vpop.f32.mrf.mxu0 }
 0xbec   :  { %v1567_v41 = vadd.f32 %v1566_v40, %v1548_v38 }
 0xbee   :  { %v1569_v43 = vmax.f32 %v1567_v41, 0.0 }
 0xbf0   :  { %1604 = vmatmul.f32.vlgmr.msra.gmra.mxu3 %v1569_v43 }
 0xc73   :  { %v1605_v47 = vpop.f32.mrf.mxu3 }
 0xc74   :  { %v1606_v17 = vadd.f32 %v1605_v47, %v1587_v45 }
 0xc76   :  { %v1608_v27 = vadd.f32 %v1606_v17, %v1524_v33 }
 0xc78   :  { %1609 = vadd.xlane.f32.xlu2 %v1608_v27 }
 0xceb   :  { %v1610_v61 = vpop.xlane.xlu2 %1609 }
 0xcec   :  { %v1611_v39 = vmul.f32 0.03125, %v1610_v61 }
 0xcee   :  { %v1612_v49 = vsub.f32 %v1608_v27, %v1611_v39 }
 0xcf0   :  { %v1613_v52 = vmul.f32 %v2550_v56, %v1612_v49  ;;  %v1705_v56 = vld [vmem:[%s2593_s22 + $0x4] sm:$0xf]  ;;  %s2129_s22 = smov [#allocation22]  }
 0xcf1   :  { %v1630_v5 = vperm.slane %v1705_v56, 0  ;;  %v1632_v7 = vperm.slane %v1705_v56, 1  ;;  %s1661_s14 = sshll.u32 %s2129_s22, 4  ;;  %s1662_s14 = int_to_ptr.vmem [resolvable:$true] %s1661_s14 }
 0xcf2   :  { %v1614_v53 = vmul.f32 %v1613_v52, %v1613_v52 }
 0xcf4   :  { %1615 = vadd.xlane.f32.xlu0 %v1614_v53 }
 0xd67   :  { %v1616_v42 = vpop.xlane.xlu0 %1615 }
 0xd68   :  { %v1617_v48 = vmul.f32 0.03125, %v1616_v42 }
 0xd6a   :  { %v1618_v50 = vadd.f32 1e-05, %v1617_v48 }
 0xd6c   :  { %1759 = vrsqrt.f32 %v1618_v50  ;;  %vm1625_vm13 = vweird.f32 %v1618_v50 }
 0xd72   :  { %v1760_v59 = vpop.eup %1759 }
 0xd73   :  { %v1620_v63 = vmul.f32 %v1760_v59, %v1618_v50  ;;  %vm1626_vm12 = vweird.f32 %v1760_v59 }
 0xd74   :  { %vm1627_vm15 = vmor %vm1625_vm13, %vm1626_vm12 }
 0xd75   :  { %v1621_v0 = vmul.f32 %v1760_v59, %v1620_v63 }
 0xd77   :  { %v1622_v35 = vmul.f32 0.5, %v1621_v0 }
 0xd79   :  { %v1623_v2 = vsub.f32 1.5, %v1622_v35 }
 0xd7b   :  { %v1624_v62 = vmul.f32 %v1760_v59, %v1623_v2 }
 0xd7d   :  { %v1628_v6 = vsel %vm1627_vm15, %v1760_v59, %v1624_v62 }
 0xd7e   :  { %v1629_v8 = vmul.f32 %v1628_v6, %v1613_v52 }
 0xd80   :  { %v1631_v10 = vmul.f32 %v1630_v5, %v1629_v8 }
 0xd82   :  { %v1633_v12 = vadd.f32 %v1632_v7, %v1631_v10 }
 0xd84   :  { %v1637_v4 = vsub.f32 %v1633_v12, %v1636_v11 }
 0xd86   :  { %v1650_v15 = vmul.f32 %v1649_v13, %v1637_v4 }
 0xd88   :  { %v1652_v18 = vmul.f32 %v1651_v14, %v1650_v15 }
 0xd8a   :  { %v1654_v19 = vadd.f32 %v1653_v16, %v1652_v18 }
 0xd8c   :  { %1655 = vst [vmem:[#allocation22] sm:$0xff] %v1654_v19 }
 0xd8d   :  { %1666 = dma.vmem_to_hbm [thread:$0]  %s1662_s14, 128, %s1664_s19, [#allocation4]  }
 0xd8e   :  { %2109 = dma.done.wait [#allocation4], 128  }
 0xd8f   :  { %2110 = vsyncadd [#allocation4], 4294967168 }
 0xd90   :  { %1671 = vsyncpa [#allocation3], 1 }
 0xd91   :  { %1672 = vsyncpa [#allocation6], 1 }
 0xd92   :  { %1673 = vsyncpa [#allocation9], 1 }
 0xd93   :  { %1674 = vsyncpa [#allocation12], 1 }
 0xd94   :  { %1675 = vsyncpa [#allocation15], 1 }
 0xd95   :  { %1676 = vsyncpa [#allocation18], 1 }
 0xd96   :  { %1677 = vsyncpa [#allocation21], 1 }
 0xd97   :  { %1678 = vsyncpa [#allocation4], 1 }

</bundles_post_ra>
